<compile_context>
chip_gen: v6e
topology: v6e:2x2x1
jax: 0.10.0
libtpu: 0.0.40
codegen_flags: <defaults>
</compile_context>

<pallas_src>
import functools

import jax
import jax.numpy as jnp
from jax import lax
from jax.experimental import pallas as pl
from jax.experimental.pallas import tpu as pltpu

EPS = 1e-5


def resblk_kernel(xph_ref, w1_ref, w2_ref, w11_ref, gamma_ref, beta_ref, out_ref,
                  *, K, factor, pad, L, Lout):
    """Single-grid-point kernel; all tensors lane-dense [.., C, Lout]."""
    B = xph_ref.shape[2]
    Cout = out_ref.shape[2]

    # ---- hoisted ref loads (everything below is values in vregs) ----
    x1ph = xph_ref[0]        # [factor, B, Cin, Lout]  max-pool branch input
    x2ph = xph_ref[1]        # [factor, B, Cin, Lout]  conv branch input
    w1v = w1_ref[...]        # [K, Cin, 1, Cout, 1]
    w2v = w2_ref[...]        # [K, Cout, 1, Cout, 1]
    w11v = w11_ref[...]      # [Cin, 1, Cout, 1]
    gamma = gamma_ref[...]   # [1, Cout, 1]
    beta = beta_ref[...]     # [1, Cout, 1]

    lane = lax.broadcasted_iota(jnp.int32, (1, 1, Lout), 2)   # hoisted lane index

    def shifted(a, q, fill):
        """r[..., j] = a[..., j + q] for 0 <= j+q < Lout, else `fill`.

        pltpu.roll (np.roll semantics) runs on the XLU slot; the boundary is
        repaired with a lane-iota mask -- no padded copies are materialized.
        """
        if q == 0:
            return a
        rolled = pltpu.roll(a, shift=(-q) % Lout, axis=2)
        keep = (lane < Lout - q) if q > 0 else (lane >= -q)
        return jnp.where(keep, rolled, fill)

    def cmul_acc(acc, w_taps, xs):
        # acc[b,co,j] += sum_ci w_taps[ci,0,co,0] * xs[b,ci,j]   (VPU broadcast FMAs)
        for ci in range(xs.shape[1]):
            acc = acc + w_taps[ci] * xs[:, ci:ci + 1, :]
        return acc

    # ---------------- branch 2: conv1 ('same', stride 1) ----------------
    # Computed directly in polyphase form: h_phase[p][.., j] = conv1(x2)[.., factor*j + p]
    x2_shift = {}
    h_phases = []
    for p in range(factor):
        h_p = jnp.zeros((B, Cout, Lout), jnp.float32)
        for t in range(K):
            q, r = divmod(p + t - pad, factor)
            if (r, q) not in x2_shift:
                x2_shift[(r, q)] = shifted(x2ph[r], q, 0.0)
            h_p = cmul_acc(h_p, w1v[t], x2_shift[(r, q)])
        h_phases.append(h_p)

    # ---------------- BatchNorm1d #1 (fresh batch stats) + ReLU ----------------
    n1 = float(B * L)
    mean1 = sum(jnp.sum(h, axis=(0, 2), keepdims=True) for h in h_phases) / n1
    var1 = sum(jnp.sum((h - mean1) * (h - mean1), axis=(0, 2), keepdims=True)
               for h in h_phases) / n1
    scale1 = gamma * lax.rsqrt(var1 + EPS)
    shift1 = beta - mean1 * scale1
    hn_phases = [jnp.maximum(h * scale1 + shift1, 0.0) for h in h_phases]
    # TODO(synk): training-mode stochastic dropout not implemented (eval = identity).

    # ---------------- conv2 (stride = factor, zero padding) ----------------
    # hn stays in registers as polyphase values; each tap is a lane shift of a phase.
    hn_shift = {}
    y2 = jnp.zeros((B, Cout, Lout), jnp.float32)
    for t in range(K):
        q, r = divmod(t - pad, factor)
        if (r, q) not in hn_shift:
            hn_shift[(r, q)] = shifted(hn_phases[r], q, 0.0)
        y2 = cmul_acc(y2, w2v[t], hn_shift[(r, q)])

    # ---------------- branch 1: MaxPool1d (-inf padding) + 1x1 conv ----------------
    pooled = None
    x1_shift = {}
    for t in range(K):
        q, r = divmod(t - pad, factor)
        if (r, q) not in x1_shift:
            x1_shift[(r, q)] = shifted(x1ph[r], q, -jnp.inf)
        xs = x1_shift[(r, q)]
        pooled = xs if pooled is None else jnp.maximum(pooled, xs)
    y1 = cmul_acc(jnp.zeros((B, Cout, Lout), jnp.float32), w11v, pooled)

    s = y1 + y2                                         # [B, Cout, Lout]

    # ---------------- BatchNorm1d #2 (same affine, fresh stats) + ReLU ----------------
    n2 = float(B * Lout)
    mean2 = jnp.sum(s, axis=(0, 2), keepdims=True) / n2
    d2 = s - mean2
    var2 = jnp.sum(d2 * d2, axis=(0, 2), keepdims=True) / n2
    scale2 = gamma * lax.rsqrt(var2 + EPS)
    shift2 = beta - mean2 * scale2

    # NCL output, lane-dense full-tile stores (no wrapper transpose on the way out).
    out_ref[0] = s
    out_ref[1] = jnp.maximum(s * scale2 + shift2, 0.0)


def resblk_forward(x, w1, w2, w11, gamma, beta, kernel_size, factor):
    """x: [2, B, Cin, L] (PyTorch NCL).  Returns [2, B, Cout, Lout] (NCL)."""
    K = kernel_size
    assert K % 2 == 1
    pad = K // 2
    two, B, Cin, L = x.shape
    assert two == 2 and L % factor == 0
    Cout = w1.shape[0]
    Lout = (L + 2 * pad - K) // factor + 1
    assert Lout == L // factor

    # Single "layout plumbing" op: polyphase view of x with Lout on lanes.
    # (No channels-last transpose, no padding pass; boundaries masked in-kernel.)
    xph = jnp.transpose(x.astype(jnp.float32).reshape(2, B, Cin, Lout, factor),
                        (0, 4, 1, 2, 3))                 # [2, factor, B, Cin, Lout]

    # Tiny weights, pre-shaped so each (tap, in-channel) slice is a
    # broadcast-ready [1, Cout, 1] vector over the output-channel sublanes.
    w1_t = jnp.transpose(w1, (2, 1, 0)).astype(jnp.float32)[:, :, None, :, None]
    w2_t = jnp.transpose(w2, (2, 1, 0)).astype(jnp.float32)[:, :, None, :, None]
    w11_t = jnp.transpose(w11[:, :, 0], (1, 0)).astype(jnp.float32)[:, None, :, None]
    gamma3 = gamma.reshape(1, Cout, 1).astype(jnp.float32)
    beta3 = beta.reshape(1, Cout, 1).astype(jnp.float32)

    kernel = functools.partial(resblk_kernel, K=K, factor=factor, pad=pad,
                               L=L, Lout=Lout)
    vmem = pl.BlockSpec(memory_space=pltpu.MemorySpace.VMEM)
    # Single grid point: BatchNorm couples the whole (tiny) batch here.  For
    # production L: grid over Lout tiles with halo reads ("parallel" on v7x),
    # split BN stats/apply, and raise vmem_limit_bytes when sizing up tiles.
    return pl.pallas_call(
        kernel,
        out_shape=jax.ShapeDtypeStruct((2, B, Cout, Lout), jnp.float32),
        in_specs=[vmem] * 6,
        out_specs=vmem,
    )(xph, w1_t, w2_t, w11_t, gamma3, beta3)


def resblk_reference(x, w1, w2, w11, gamma, beta, K, factor):
    """Pure-JAX reference (eval-mode torch semantics)."""
    pad = K // 2
    x1, x2 = x[0].astype(jnp.float32), x[1].astype(jnp.float32)
    dn = ('NCH', 'OIH', 'NCH')

    x1p = lax.reduce_window(x1, -jnp.inf, lax.max,
                            window_dimensions=(1, 1, K),
                            window_strides=(1, 1, factor),
                            padding=((0, 0), (0, 0), (pad, pad)))
    y1 = lax.conv_general_dilated(x1p, w11, (1,), [(0, 0)],
                                  dimension_numbers=dn,
                                  precision=lax.Precision.HIGHEST)
    h = lax.conv_general_dilated(x2, w1, (1,), [(pad, pad)],
                                 dimension_numbers=dn,
                                 precision=lax.Precision.HIGHEST)

    def bn_relu(v):
        m = v.mean(axis=(0, 2), keepdims=True)
        var = v.var(axis=(0, 2), keepdims=True)
        vn = (v - m) / jnp.sqrt(var + EPS)
        return jnp.maximum(vn * gamma[None, :, None] + beta[None, :, None], 0.0)

    hn = bn_relu(h)
    y2 = lax.conv_general_dilated(hn, w2, (factor,), [(pad, pad)],
                                  dimension_numbers=dn,
                                  precision=lax.Precision.HIGHEST)
    s = y1 + y2
    return jnp.stack([s, bn_relu(s)], axis=0)


if __name__ == "__main__":
    # module config: kernel_size=3, dropout=0.1, in_channels=4, out_channels=8, factor=2
    kernel_size, factor = 3, 2
    Cin, Cout = 4, 8
    B, L = 2, 256          # L chosen so Lout = 128 -> full-lane (unmasked) output stores

    key = jax.random.PRNGKey(0)
    k1, k2, k3, k4, k5, k6 = jax.random.split(key, 6)
    x = jax.random.normal(k1, (2, B, Cin, L), jnp.float32)
    # deterministic synthetic parameters (shapes per the torch __init__)
    w1 = 0.3 * jax.random.normal(k2, (Cout, Cin, kernel_size), jnp.float32)
    w2 = 0.3 * jax.random.normal(k3, (Cout, Cout, kernel_size), jnp.float32)
    w11 = 0.3 * jax.random.normal(k4, (Cout, Cin, 1), jnp.float32)
    gamma = 1.0 + 0.1 * jax.random.normal(k5, (Cout,), jnp.float32)
    beta = 0.1 * jax.random.normal(k6, (Cout,), jnp.float32)

    out = jax.block_until_ready(
        resblk_forward(x, w1, w2, w11, gamma, beta, kernel_size, factor))
    ref = jax.block_until_ready(
        resblk_reference(x, w1, w2, w11, gamma, beta, kernel_size, factor))

    assert out.shape == ref.shape == (2, B, Cout, L // factor), (out.shape, ref.shape)
    max_err = float(jnp.max(jnp.abs(out - ref)))
    assert max_err < 1e-3, f"max abs error {max_err}"
    print("KERNEL_OK")
</pallas_src>

<mosaic_0001>
module attributes {stable_mosaic.version = 11 : i64} {
  func.func @resblk_kernel(%arg0: memref<2x2x2x4x128xf32, #tpu.memory_space<vmem>>, %arg1: memref<3x4x1x8x1xf32, #tpu.memory_space<vmem>>, %arg2: memref<3x8x1x8x1xf32, #tpu.memory_space<vmem>>, %arg3: memref<4x1x8x1xf32, #tpu.memory_space<vmem>>, %arg4: memref<1x8x1xf32, #tpu.memory_space<vmem>>, %arg5: memref<1x8x1xf32, #tpu.memory_space<vmem>>, %arg6: memref<2x2x8x128xf32, #tpu.memory_space<vmem>>) attributes {dimension_semantics = [], scalar_prefetch = 0 : i64, scratch_operands = 0 : i64, tpu.core_type = #tpu.core_type<tc>} {
    %c0 = arith.constant 0 : index
    %c0_0 = arith.constant 0 : index
    %c0_1 = arith.constant 0 : index
    %c0_2 = arith.constant 0 : index
    %c0_3 = arith.constant 0 : index
    %0 = vector.load %arg0[%c0, %c0_0, %c0_1, %c0_2, %c0_3] : memref<2x2x2x4x128xf32, #tpu.memory_space<vmem>>, vector<1x2x2x4x128xf32>
    %1 = vector.shape_cast %0 : vector<1x2x2x4x128xf32> to vector<2x2x4x128xf32>
    %c1 = arith.constant 1 : index
    %c0_4 = arith.constant 0 : index
    %c0_5 = arith.constant 0 : index
    %c0_6 = arith.constant 0 : index
    %c0_7 = arith.constant 0 : index
    %2 = vector.load %arg0[%c1, %c0_4, %c0_5, %c0_6, %c0_7] : memref<2x2x2x4x128xf32, #tpu.memory_space<vmem>>, vector<1x2x2x4x128xf32>
    %3 = vector.shape_cast %2 : vector<1x2x2x4x128xf32> to vector<2x2x4x128xf32>
    %c0_8 = arith.constant 0 : index
    %c0_9 = arith.constant 0 : index
    %c0_10 = arith.constant 0 : index
    %c0_11 = arith.constant 0 : index
    %c0_12 = arith.constant 0 : index
    %4 = vector.load %arg1[%c0_8, %c0_9, %c0_10, %c0_11, %c0_12] : memref<3x4x1x8x1xf32, #tpu.memory_space<vmem>>, vector<3x4x1x8x1xf32>
    %c0_13 = arith.constant 0 : index
    %c0_14 = arith.constant 0 : index
    %c0_15 = arith.constant 0 : index
    %c0_16 = arith.constant 0 : index
    %c0_17 = arith.constant 0 : index
    %5 = vector.load %arg2[%c0_13, %c0_14, %c0_15, %c0_16, %c0_17] : memref<3x8x1x8x1xf32, #tpu.memory_space<vmem>>, vector<3x8x1x8x1xf32>
    %c0_18 = arith.constant 0 : index
    %c0_19 = arith.constant 0 : index
    %c0_20 = arith.constant 0 : index
    %c0_21 = arith.constant 0 : index
    %6 = vector.load %arg3[%c0_18, %c0_19, %c0_20, %c0_21] : memref<4x1x8x1xf32, #tpu.memory_space<vmem>>, vector<4x1x8x1xf32>
    %c0_22 = arith.constant 0 : index
    %c0_23 = arith.constant 0 : index
    %c0_24 = arith.constant 0 : index
    %7 = vector.load %arg4[%c0_22, %c0_23, %c0_24] : memref<1x8x1xf32, #tpu.memory_space<vmem>>, vector<1x8x1xf32>
    %c0_25 = arith.constant 0 : index
    %c0_26 = arith.constant 0 : index
    %c0_27 = arith.constant 0 : index
    %8 = vector.load %arg5[%c0_25, %c0_26, %c0_27] : memref<1x8x1xf32, #tpu.memory_space<vmem>>, vector<1x8x1xf32>
    %9 = tpu.iota {dimensions = array<i32: 2>} : vector<1x1x128xi32>
    %cst = arith.constant 0.000000e+00 : f32
    %10 = vector.broadcast %cst : f32 to vector<2x8x128xf32>
    %11 = vector.extract_strided_slice %3 {offsets = [1, 0, 0, 0], sizes = [1, 2, 4, 128], strides = [1, 1, 1, 1]} : vector<2x2x4x128xf32> to vector<1x2x4x128xf32>
    %12 = vector.shape_cast %11 : vector<1x2x4x128xf32> to vector<2x4x128xf32>
    %c1_i32 = arith.constant 1 : i32
    %13 = tpu.dynamic_rotate %12 by %c1_i32 dim 2 : vector<2x4x128xf32>, i32 -> vector<2x4x128xf32>
    %c1_i32_28 = arith.constant 1 : i32
    %14 = vector.broadcast %c1_i32_28 : i32 to vector<1x1x128xi32>
    %15 = arith.cmpi sge, %9, %14 : vector<1x1x128xi32>
    %cst_29 = arith.constant 0.000000e+00 : f32
    %16 = vector.shape_cast %15 : vector<1x1x128xi1> to vector<1x1x128xi1>
    %17 = vector.broadcast %16 : vector<1x1x128xi1> to vector<2x4x128xi1>
    %18 = vector.broadcast %cst_29 : f32 to vector<2x4x128xf32>
    %19 = arith.select %17, %13, %18 : vector<2x4x128xi1>, vector<2x4x128xf32>
    %20 = vector.extract_strided_slice %4 {offsets = [0, 0, 0, 0, 0], sizes = [1, 4, 1, 8, 1], strides = [1, 1, 1, 1, 1]} : vector<3x4x1x8x1xf32> to vector<1x4x1x8x1xf32>
    %21 = vector.shape_cast %20 : vector<1x4x1x8x1xf32> to vector<4x1x8x1xf32>
    %22 = vector.extract_strided_slice %21 {offsets = [0, 0, 0, 0], sizes = [1, 1, 8, 1], strides = [1, 1, 1, 1]} : vector<4x1x8x1xf32> to vector<1x1x8x1xf32>
    %23 = vector.shape_cast %22 : vector<1x1x8x1xf32> to vector<1x8x1xf32>
    %24 = vector.extract_strided_slice %19 {offsets = [0, 0, 0], sizes = [2, 1, 128], strides = [1, 1, 1]} : vector<2x4x128xf32> to vector<2x1x128xf32>
    %25 = vector.broadcast %23 : vector<1x8x1xf32> to vector<2x8x128xf32>
    %26 = vector.broadcast %24 : vector<2x1x128xf32> to vector<2x8x128xf32>
    %27 = arith.mulf %25, %26 : vector<2x8x128xf32>
    %28 = arith.addf %10, %27 : vector<2x8x128xf32>
    %29 = vector.extract_strided_slice %21 {offsets = [1, 0, 0, 0], sizes = [1, 1, 8, 1], strides = [1, 1, 1, 1]} : vector<4x1x8x1xf32> to vector<1x1x8x1xf32>
    %30 = vector.shape_cast %29 : vector<1x1x8x1xf32> to vector<1x8x1xf32>
    %31 = vector.extract_strided_slice %19 {offsets = [0, 1, 0], sizes = [2, 1, 128], strides = [1, 1, 1]} : vector<2x4x128xf32> to vector<2x1x128xf32>
    %32 = vector.broadcast %30 : vector<1x8x1xf32> to vector<2x8x128xf32>
    %33 = vector.broadcast %31 : vector<2x1x128xf32> to vector<2x8x128xf32>
    %34 = arith.mulf %32, %33 : vector<2x8x128xf32>
    %35 = arith.addf %28, %34 : vector<2x8x128xf32>
    %36 = vector.extract_strided_slice %21 {offsets = [2, 0, 0, 0], sizes = [1, 1, 8, 1], strides = [1, 1, 1, 1]} : vector<4x1x8x1xf32> to vector<1x1x8x1xf32>
    %37 = vector.shape_cast %36 : vector<1x1x8x1xf32> to vector<1x8x1xf32>
    %38 = vector.extract_strided_slice %19 {offsets = [0, 2, 0], sizes = [2, 1, 128], strides = [1, 1, 1]} : vector<2x4x128xf32> to vector<2x1x128xf32>
    %39 = vector.broadcast %37 : vector<1x8x1xf32> to vector<2x8x128xf32>
    %40 = vector.broadcast %38 : vector<2x1x128xf32> to vector<2x8x128xf32>
    %41 = arith.mulf %39, %40 : vector<2x8x128xf32>
    %42 = arith.addf %35, %41 : vector<2x8x128xf32>
    %43 = vector.extract_strided_slice %21 {offsets = [3, 0, 0, 0], sizes = [1, 1, 8, 1], strides = [1, 1, 1, 1]} : vector<4x1x8x1xf32> to vector<1x1x8x1xf32>
    %44 = vector.shape_cast %43 : vector<1x1x8x1xf32> to vector<1x8x1xf32>
    %45 = vector.extract_strided_slice %19 {offsets = [0, 3, 0], sizes = [2, 1, 128], strides = [1, 1, 1]} : vector<2x4x128xf32> to vector<2x1x128xf32>
    %46 = vector.broadcast %44 : vector<1x8x1xf32> to vector<2x8x128xf32>
    %47 = vector.broadcast %45 : vector<2x1x128xf32> to vector<2x8x128xf32>
    %48 = arith.mulf %46, %47 : vector<2x8x128xf32>
    %49 = arith.addf %42, %48 : vector<2x8x128xf32>
    %50 = vector.extract_strided_slice %3 {offsets = [0, 0, 0, 0], sizes = [1, 2, 4, 128], strides = [1, 1, 1, 1]} : vector<2x2x4x128xf32> to vector<1x2x4x128xf32>
    %51 = vector.shape_cast %50 : vector<1x2x4x128xf32> to vector<2x4x128xf32>
    %52 = vector.extract_strided_slice %4 {offsets = [1, 0, 0, 0, 0], sizes = [1, 4, 1, 8, 1], strides = [1, 1, 1, 1, 1]} : vector<3x4x1x8x1xf32> to vector<1x4x1x8x1xf32>
    %53 = vector.shape_cast %52 : vector<1x4x1x8x1xf32> to vector<4x1x8x1xf32>
    %54 = vector.extract_strided_slice %53 {offsets = [0, 0, 0, 0], sizes = [1, 1, 8, 1], strides = [1, 1, 1, 1]} : vector<4x1x8x1xf32> to vector<1x1x8x1xf32>
    %55 = vector.shape_cast %54 : vector<1x1x8x1xf32> to vector<1x8x1xf32>
    %56 = vector.extract_strided_slice %51 {offsets = [0, 0, 0], sizes = [2, 1, 128], strides = [1, 1, 1]} : vector<2x4x128xf32> to vector<2x1x128xf32>
    %57 = vector.broadcast %55 : vector<1x8x1xf32> to vector<2x8x128xf32>
    %58 = vector.broadcast %56 : vector<2x1x128xf32> to vector<2x8x128xf32>
    %59 = arith.mulf %57, %58 : vector<2x8x128xf32>
    %60 = arith.addf %49, %59 : vector<2x8x128xf32>
    %61 = vector.extract_strided_slice %53 {offsets = [1, 0, 0, 0], sizes = [1, 1, 8, 1], strides = [1, 1, 1, 1]} : vector<4x1x8x1xf32> to vector<1x1x8x1xf32>
    %62 = vector.shape_cast %61 : vector<1x1x8x1xf32> to vector<1x8x1xf32>
    %63 = vector.extract_strided_slice %51 {offsets = [0, 1, 0], sizes = [2, 1, 128], strides = [1, 1, 1]} : vector<2x4x128xf32> to vector<2x1x128xf32>
    %64 = vector.broadcast %62 : vector<1x8x1xf32> to vector<2x8x128xf32>
    %65 = vector.broadcast %63 : vector<2x1x128xf32> to vector<2x8x128xf32>
    %66 = arith.mulf %64, %65 : vector<2x8x128xf32>
    %67 = arith.addf %60, %66 : vector<2x8x128xf32>
    %68 = vector.extract_strided_slice %53 {offsets = [2, 0, 0, 0], sizes = [1, 1, 8, 1], strides = [1, 1, 1, 1]} : vector<4x1x8x1xf32> to vector<1x1x8x1xf32>
    %69 = vector.shape_cast %68 : vector<1x1x8x1xf32> to vector<1x8x1xf32>
    %70 = vector.extract_strided_slice %51 {offsets = [0, 2, 0], sizes = [2, 1, 128], strides = [1, 1, 1]} : vector<2x4x128xf32> to vector<2x1x128xf32>
    %71 = vector.broadcast %69 : vector<1x8x1xf32> to vector<2x8x128xf32>
    %72 = vector.broadcast %70 : vector<2x1x128xf32> to vector<2x8x128xf32>
    %73 = arith.mulf %71, %72 : vector<2x8x128xf32>
    %74 = arith.addf %67, %73 : vector<2x8x128xf32>
    %75 = vector.extract_strided_slice %53 {offsets = [3, 0, 0, 0], sizes = [1, 1, 8, 1], strides = [1, 1, 1, 1]} : vector<4x1x8x1xf32> to vector<1x1x8x1xf32>
    %76 = vector.shape_cast %75 : vector<1x1x8x1xf32> to vector<1x8x1xf32>
    %77 = vector.extract_strided_slice %51 {offsets = [0, 3, 0], sizes = [2, 1, 128], strides = [1, 1, 1]} : vector<2x4x128xf32> to vector<2x1x128xf32>
    %78 = vector.broadcast %76 : vector<1x8x1xf32> to vector<2x8x128xf32>
    %79 = vector.broadcast %77 : vector<2x1x128xf32> to vector<2x8x128xf32>
    %80 = arith.mulf %78, %79 : vector<2x8x128xf32>
    %81 = arith.addf %74, %80 : vector<2x8x128xf32>
    %82 = vector.extract_strided_slice %3 {offsets = [1, 0, 0, 0], sizes = [1, 2, 4, 128], strides = [1, 1, 1, 1]} : vector<2x2x4x128xf32> to vector<1x2x4x128xf32>
    %83 = vector.shape_cast %82 : vector<1x2x4x128xf32> to vector<2x4x128xf32>
    %84 = vector.extract_strided_slice %4 {offsets = [2, 0, 0, 0, 0], sizes = [1, 4, 1, 8, 1], strides = [1, 1, 1, 1, 1]} : vector<3x4x1x8x1xf32> to vector<1x4x1x8x1xf32>
    %85 = vector.shape_cast %84 : vector<1x4x1x8x1xf32> to vector<4x1x8x1xf32>
    %86 = vector.extract_strided_slice %85 {offsets = [0, 0, 0, 0], sizes = [1, 1, 8, 1], strides = [1, 1, 1, 1]} : vector<4x1x8x1xf32> to vector<1x1x8x1xf32>
    %87 = vector.shape_cast %86 : vector<1x1x8x1xf32> to vector<1x8x1xf32>
    %88 = vector.extract_strided_slice %83 {offsets = [0, 0, 0], sizes = [2, 1, 128], strides = [1, 1, 1]} : vector<2x4x128xf32> to vector<2x1x128xf32>
    %89 = vector.broadcast %87 : vector<1x8x1xf32> to vector<2x8x128xf32>
    %90 = vector.broadcast %88 : vector<2x1x128xf32> to vector<2x8x128xf32>
    %91 = arith.mulf %89, %90 : vector<2x8x128xf32>
    %92 = arith.addf %81, %91 : vector<2x8x128xf32>
    %93 = vector.extract_strided_slice %85 {offsets = [1, 0, 0, 0], sizes = [1, 1, 8, 1], strides = [1, 1, 1, 1]} : vector<4x1x8x1xf32> to vector<1x1x8x1xf32>
    %94 = vector.shape_cast %93 : vector<1x1x8x1xf32> to vector<1x8x1xf32>
    %95 = vector.extract_strided_slice %83 {offsets = [0, 1, 0], sizes = [2, 1, 128], strides = [1, 1, 1]} : vector<2x4x128xf32> to vector<2x1x128xf32>
    %96 = vector.broadcast %94 : vector<1x8x1xf32> to vector<2x8x128xf32>
    %97 = vector.broadcast %95 : vector<2x1x128xf32> to vector<2x8x128xf32>
    %98 = arith.mulf %96, %97 : vector<2x8x128xf32>
    %99 = arith.addf %92, %98 : vector<2x8x128xf32>
    %100 = vector.extract_strided_slice %85 {offsets = [2, 0, 0, 0], sizes = [1, 1, 8, 1], strides = [1, 1, 1, 1]} : vector<4x1x8x1xf32> to vector<1x1x8x1xf32>
    %101 = vector.shape_cast %100 : vector<1x1x8x1xf32> to vector<1x8x1xf32>
    %102 = vector.extract_strided_slice %83 {offsets = [0, 2, 0], sizes = [2, 1, 128], strides = [1, 1, 1]} : vector<2x4x128xf32> to vector<2x1x128xf32>
    %103 = vector.broadcast %101 : vector<1x8x1xf32> to vector<2x8x128xf32>
    %104 = vector.broadcast %102 : vector<2x1x128xf32> to vector<2x8x128xf32>
    %105 = arith.mulf %103, %104 : vector<2x8x128xf32>
    %106 = arith.addf %99, %105 : vector<2x8x128xf32>
    %107 = vector.extract_strided_slice %85 {offsets = [3, 0, 0, 0], sizes = [1, 1, 8, 1], strides = [1, 1, 1, 1]} : vector<4x1x8x1xf32> to vector<1x1x8x1xf32>
    %108 = vector.shape_cast %107 : vector<1x1x8x1xf32> to vector<1x8x1xf32>
    %109 = vector.extract_strided_slice %83 {offsets = [0, 3, 0], sizes = [2, 1, 128], strides = [1, 1, 1]} : vector<2x4x128xf32> to vector<2x1x128xf32>
    %110 = vector.broadcast %108 : vector<1x8x1xf32> to vector<2x8x128xf32>
    %111 = vector.broadcast %109 : vector<2x1x128xf32> to vector<2x8x128xf32>
    %112 = arith.mulf %110, %111 : vector<2x8x128xf32>
    %113 = arith.addf %106, %112 : vector<2x8x128xf32>
    %cst_30 = arith.constant 0.000000e+00 : f32
    %114 = vector.broadcast %cst_30 : f32 to vector<2x8x128xf32>
    %115 = vector.extract_strided_slice %4 {offsets = [0, 0, 0, 0, 0], sizes = [1, 4, 1, 8, 1], strides = [1, 1, 1, 1, 1]} : vector<3x4x1x8x1xf32> to vector<1x4x1x8x1xf32>
    %116 = vector.shape_cast %115 : vector<1x4x1x8x1xf32> to vector<4x1x8x1xf32>
    %117 = vector.extract_strided_slice %116 {offsets = [0, 0, 0, 0], sizes = [1, 1, 8, 1], strides = [1, 1, 1, 1]} : vector<4x1x8x1xf32> to vector<1x1x8x1xf32>
    %118 = vector.shape_cast %117 : vector<1x1x8x1xf32> to vector<1x8x1xf32>
    %119 = vector.extract_strided_slice %51 {offsets = [0, 0, 0], sizes = [2, 1, 128], strides = [1, 1, 1]} : vector<2x4x128xf32> to vector<2x1x128xf32>
    %120 = vector.broadcast %118 : vector<1x8x1xf32> to vector<2x8x128xf32>
    %121 = vector.broadcast %119 : vector<2x1x128xf32> to vector<2x8x128xf32>
    %122 = arith.mulf %120, %121 : vector<2x8x128xf32>
    %123 = arith.addf %114, %122 : vector<2x8x128xf32>
    %124 = vector.extract_strided_slice %116 {offsets = [1, 0, 0, 0], sizes = [1, 1, 8, 1], strides = [1, 1, 1, 1]} : vector<4x1x8x1xf32> to vector<1x1x8x1xf32>
    %125 = vector.shape_cast %124 : vector<1x1x8x1xf32> to vector<1x8x1xf32>
    %126 = vector.extract_strided_slice %51 {offsets = [0, 1, 0], sizes = [2, 1, 128], strides = [1, 1, 1]} : vector<2x4x128xf32> to vector<2x1x128xf32>
    %127 = vector.broadcast %125 : vector<1x8x1xf32> to vector<2x8x128xf32>
    %128 = vector.broadcast %126 : vector<2x1x128xf32> to vector<2x8x128xf32>
    %129 = arith.mulf %127, %128 : vector<2x8x128xf32>
    %130 = arith.addf %123, %129 : vector<2x8x128xf32>
    %131 = vector.extract_strided_slice %116 {offsets = [2, 0, 0, 0], sizes = [1, 1, 8, 1], strides = [1, 1, 1, 1]} : vector<4x1x8x1xf32> to vector<1x1x8x1xf32>
    %132 = vector.shape_cast %131 : vector<1x1x8x1xf32> to vector<1x8x1xf32>
    %133 = vector.extract_strided_slice %51 {offsets = [0, 2, 0], sizes = [2, 1, 128], strides = [1, 1, 1]} : vector<2x4x128xf32> to vector<2x1x128xf32>
    %134 = vector.broadcast %132 : vector<1x8x1xf32> to vector<2x8x128xf32>
    %135 = vector.broadcast %133 : vector<2x1x128xf32> to vector<2x8x128xf32>
    %136 = arith.mulf %134, %135 : vector<2x8x128xf32>
    %137 = arith.addf %130, %136 : vector<2x8x128xf32>
    %138 = vector.extract_strided_slice %116 {offsets = [3, 0, 0, 0], sizes = [1, 1, 8, 1], strides = [1, 1, 1, 1]} : vector<4x1x8x1xf32> to vector<1x1x8x1xf32>
    %139 = vector.shape_cast %138 : vector<1x1x8x1xf32> to vector<1x8x1xf32>
    %140 = vector.extract_strided_slice %51 {offsets = [0, 3, 0], sizes = [2, 1, 128], strides = [1, 1, 1]} : vector<2x4x128xf32> to vector<2x1x128xf32>
    %141 = vector.broadcast %139 : vector<1x8x1xf32> to vector<2x8x128xf32>
    %142 = vector.broadcast %140 : vector<2x1x128xf32> to vector<2x8x128xf32>
    %143 = arith.mulf %141, %142 : vector<2x8x128xf32>
    %144 = arith.addf %137, %143 : vector<2x8x128xf32>
    %145 = vector.extract_strided_slice %4 {offsets = [1, 0, 0, 0, 0], sizes = [1, 4, 1, 8, 1], strides = [1, 1, 1, 1, 1]} : vector<3x4x1x8x1xf32> to vector<1x4x1x8x1xf32>
    %146 = vector.shape_cast %145 : vector<1x4x1x8x1xf32> to vector<4x1x8x1xf32>
    %147 = vector.extract_strided_slice %146 {offsets = [0, 0, 0, 0], sizes = [1, 1, 8, 1], strides = [1, 1, 1, 1]} : vector<4x1x8x1xf32> to vector<1x1x8x1xf32>
    %148 = vector.shape_cast %147 : vector<1x1x8x1xf32> to vector<1x8x1xf32>
    %149 = vector.extract_strided_slice %83 {offsets = [0, 0, 0], sizes = [2, 1, 128], strides = [1, 1, 1]} : vector<2x4x128xf32> to vector<2x1x128xf32>
    %150 = vector.broadcast %148 : vector<1x8x1xf32> to vector<2x8x128xf32>
    %151 = vector.broadcast %149 : vector<2x1x128xf32> to vector<2x8x128xf32>
    %152 = arith.mulf %150, %151 : vector<2x8x128xf32>
    %153 = arith.addf %144, %152 : vector<2x8x128xf32>
    %154 = vector.extract_strided_slice %146 {offsets = [1, 0, 0, 0], sizes = [1, 1, 8, 1], strides = [1, 1, 1, 1]} : vector<4x1x8x1xf32> to vector<1x1x8x1xf32>
    %155 = vector.shape_cast %154 : vector<1x1x8x1xf32> to vector<1x8x1xf32>
    %156 = vector.extract_strided_slice %83 {offsets = [0, 1, 0], sizes = [2, 1, 128], strides = [1, 1, 1]} : vector<2x4x128xf32> to vector<2x1x128xf32>
    %157 = vector.broadcast %155 : vector<1x8x1xf32> to vector<2x8x128xf32>
    %158 = vector.broadcast %156 : vector<2x1x128xf32> to vector<2x8x128xf32>
    %159 = arith.mulf %157, %158 : vector<2x8x128xf32>
    %160 = arith.addf %153, %159 : vector<2x8x128xf32>
    %161 = vector.extract_strided_slice %146 {offsets = [2, 0, 0, 0], sizes = [1, 1, 8, 1], strides = [1, 1, 1, 1]} : vector<4x1x8x1xf32> to vector<1x1x8x1xf32>
    %162 = vector.shape_cast %161 : vector<1x1x8x1xf32> to vector<1x8x1xf32>
    %163 = vector.extract_strided_slice %83 {offsets = [0, 2, 0], sizes = [2, 1, 128], strides = [1, 1, 1]} : vector<2x4x128xf32> to vector<2x1x128xf32>
    %164 = vector.broadcast %162 : vector<1x8x1xf32> to vector<2x8x128xf32>
    %165 = vector.broadcast %163 : vector<2x1x128xf32> to vector<2x8x128xf32>
    %166 = arith.mulf %164, %165 : vector<2x8x128xf32>
    %167 = arith.addf %160, %166 : vector<2x8x128xf32>
    %168 = vector.extract_strided_slice %146 {offsets = [3, 0, 0, 0], sizes = [1, 1, 8, 1], strides = [1, 1, 1, 1]} : vector<4x1x8x1xf32> to vector<1x1x8x1xf32>
    %169 = vector.shape_cast %168 : vector<1x1x8x1xf32> to vector<1x8x1xf32>
    %170 = vector.extract_strided_slice %83 {offsets = [0, 3, 0], sizes = [2, 1, 128], strides = [1, 1, 1]} : vector<2x4x128xf32> to vector<2x1x128xf32>
    %171 = vector.broadcast %169 : vector<1x8x1xf32> to vector<2x8x128xf32>
    %172 = vector.broadcast %170 : vector<2x1x128xf32> to vector<2x8x128xf32>
    %173 = arith.mulf %171, %172 : vector<2x8x128xf32>
    %174 = arith.addf %167, %173 : vector<2x8x128xf32>
    %175 = vector.extract_strided_slice %3 {offsets = [0, 0, 0, 0], sizes = [1, 2, 4, 128], strides = [1, 1, 1, 1]} : vector<2x2x4x128xf32> to vector<1x2x4x128xf32>
    %176 = vector.shape_cast %175 : vector<1x2x4x128xf32> to vector<2x4x128xf32>
    %c127_i32 = arith.constant 127 : i32
    %177 = tpu.dynamic_rotate %176 by %c127_i32 dim 2 : vector<2x4x128xf32>, i32 -> vector<2x4x128xf32>
    %c127_i32_31 = arith.constant 127 : i32
    %178 = vector.broadcast %c127_i32_31 : i32 to vector<1x1x128xi32>
    %179 = arith.cmpi slt, %9, %178 : vector<1x1x128xi32>
    %cst_32 = arith.constant 0.000000e+00 : f32
    %180 = vector.shape_cast %179 : vector<1x1x128xi1> to vector<1x1x128xi1>
    %181 = vector.broadcast %180 : vector<1x1x128xi1> to vector<2x4x128xi1>
    %182 = vector.broadcast %cst_32 : f32 to vector<2x4x128xf32>
    %183 = arith.select %181, %177, %182 : vector<2x4x128xi1>, vector<2x4x128xf32>
    %184 = vector.extract_strided_slice %4 {offsets = [2, 0, 0, 0, 0], sizes = [1, 4, 1, 8, 1], strides = [1, 1, 1, 1, 1]} : vector<3x4x1x8x1xf32> to vector<1x4x1x8x1xf32>
    %185 = vector.shape_cast %184 : vector<1x4x1x8x1xf32> to vector<4x1x8x1xf32>
    %186 = vector.extract_strided_slice %185 {offsets = [0, 0, 0, 0], sizes = [1, 1, 8, 1], strides = [1, 1, 1, 1]} : vector<4x1x8x1xf32> to vector<1x1x8x1xf32>
    %187 = vector.shape_cast %186 : vector<1x1x8x1xf32> to vector<1x8x1xf32>
    %188 = vector.extract_strided_slice %183 {offsets = [0, 0, 0], sizes = [2, 1, 128], strides = [1, 1, 1]} : vector<2x4x128xf32> to vector<2x1x128xf32>
    %189 = vector.broadcast %187 : vector<1x8x1xf32> to vector<2x8x128xf32>
    %190 = vector.broadcast %188 : vector<2x1x128xf32> to vector<2x8x128xf32>
    %191 = arith.mulf %189, %190 : vector<2x8x128xf32>
    %192 = arith.addf %174, %191 : vector<2x8x128xf32>
    %193 = vector.extract_strided_slice %185 {offsets = [1, 0, 0, 0], sizes = [1, 1, 8, 1], strides = [1, 1, 1, 1]} : vector<4x1x8x1xf32> to vector<1x1x8x1xf32>
    %194 = vector.shape_cast %193 : vector<1x1x8x1xf32> to vector<1x8x1xf32>
    %195 = vector.extract_strided_slice %183 {offsets = [0, 1, 0], sizes = [2, 1, 128], strides = [1, 1, 1]} : vector<2x4x128xf32> to vector<2x1x128xf32>
    %196 = vector.broadcast %194 : vector<1x8x1xf32> to vector<2x8x128xf32>
    %197 = vector.broadcast %195 : vector<2x1x128xf32> to vector<2x8x128xf32>
    %198 = arith.mulf %196, %197 : vector<2x8x128xf32>
    %199 = arith.addf %192, %198 : vector<2x8x128xf32>
    %200 = vector.extract_strided_slice %185 {offsets = [2, 0, 0, 0], sizes = [1, 1, 8, 1], strides = [1, 1, 1, 1]} : vector<4x1x8x1xf32> to vector<1x1x8x1xf32>
    %201 = vector.shape_cast %200 : vector<1x1x8x1xf32> to vector<1x8x1xf32>
    %202 = vector.extract_strided_slice %183 {offsets = [0, 2, 0], sizes = [2, 1, 128], strides = [1, 1, 1]} : vector<2x4x128xf32> to vector<2x1x128xf32>
    %203 = vector.broadcast %201 : vector<1x8x1xf32> to vector<2x8x128xf32>
    %204 = vector.broadcast %202 : vector<2x1x128xf32> to vector<2x8x128xf32>
    %205 = arith.mulf %203, %204 : vector<2x8x128xf32>
    %206 = arith.addf %199, %205 : vector<2x8x128xf32>
    %207 = vector.extract_strided_slice %185 {offsets = [3, 0, 0, 0], sizes = [1, 1, 8, 1], strides = [1, 1, 1, 1]} : vector<4x1x8x1xf32> to vector<1x1x8x1xf32>
    %208 = vector.shape_cast %207 : vector<1x1x8x1xf32> to vector<1x8x1xf32>
    %209 = vector.extract_strided_slice %183 {offsets = [0, 3, 0], sizes = [2, 1, 128], strides = [1, 1, 1]} : vector<2x4x128xf32> to vector<2x1x128xf32>
    %210 = vector.broadcast %208 : vector<1x8x1xf32> to vector<2x8x128xf32>
    %211 = vector.broadcast %209 : vector<2x1x128xf32> to vector<2x8x128xf32>
    %212 = arith.mulf %210, %211 : vector<2x8x128xf32>
    %213 = arith.addf %206, %212 : vector<2x8x128xf32>
    %cst_33 = arith.constant dense<0.000000e+00> : vector<8xf32>
    %214 = vector.multi_reduction <add>, %113, %cst_33 [0, 2] : vector<2x8x128xf32> to vector<8xf32>
    %215 = vector.shape_cast %214 : vector<8xf32> to vector<1x8x1xf32>
    %cst_34 = arith.constant 0.000000e+00 : f32
    %216 = vector.broadcast %cst_34 : f32 to vector<1x8x1xf32>
    %217 = arith.addf %216, %215 : vector<1x8x1xf32>
    %cst_35 = arith.constant dense<0.000000e+00> : vector<8xf32>
    %218 = vector.multi_reduction <add>, %213, %cst_35 [0, 2] : vector<2x8x128xf32> to vector<8xf32>
    %219 = vector.shape_cast %218 : vector<8xf32> to vector<1x8x1xf32>
    %220 = arith.addf %217, %219 : vector<1x8x1xf32>
    %cst_36 = arith.constant 5.120000e+02 : f32
    %221 = vector.broadcast %cst_36 : f32 to vector<1x8x1xf32>
    %222 = arith.divf %220, %221 : vector<1x8x1xf32>
    %223 = vector.broadcast %222 : vector<1x8x1xf32> to vector<2x8x128xf32>
    %224 = arith.subf %113, %223 : vector<2x8x128xf32>
    %225 = vector.broadcast %222 : vector<1x8x1xf32> to vector<2x8x128xf32>
    %226 = arith.subf %113, %225 : vector<2x8x128xf32>
    %227 = arith.mulf %224, %226 : vector<2x8x128xf32>
    %cst_37 = arith.constant dense<0.000000e+00> : vector<8xf32>
    %228 = vector.multi_reduction <add>, %227, %cst_37 [0, 2] : vector<2x8x128xf32> to vector<8xf32>
    %229 = vector.shape_cast %228 : vector<8xf32> to vector<1x8x1xf32>
    %cst_38 = arith.constant 0.000000e+00 : f32
    %230 = vector.broadcast %cst_38 : f32 to vector<1x8x1xf32>
    %231 = arith.addf %230, %229 : vector<1x8x1xf32>
    %232 = vector.broadcast %222 : vector<1x8x1xf32> to vector<2x8x128xf32>
    %233 = arith.subf %213, %232 : vector<2x8x128xf32>
    %234 = vector.broadcast %222 : vector<1x8x1xf32> to vector<2x8x128xf32>
    %235 = arith.subf %213, %234 : vector<2x8x128xf32>
    %236 = arith.mulf %233, %235 : vector<2x8x128xf32>
    %cst_39 = arith.constant dense<0.000000e+00> : vector<8xf32>
    %237 = vector.multi_reduction <add>, %236, %cst_39 [0, 2] : vector<2x8x128xf32> to vector<8xf32>
    %238 = vector.shape_cast %237 : vector<8xf32> to vector<1x8x1xf32>
    %239 = arith.addf %231, %238 : vector<1x8x1xf32>
    %cst_40 = arith.constant 5.120000e+02 : f32
    %240 = vector.broadcast %cst_40 : f32 to vector<1x8x1xf32>
    %241 = arith.divf %239, %240 : vector<1x8x1xf32>
    %cst_41 = arith.constant 9.99999974E-6 : f32
    %242 = vector.broadcast %cst_41 : f32 to vector<1x8x1xf32>
    %243 = arith.addf %241, %242 : vector<1x8x1xf32>
    %244 = math.rsqrt %243 : vector<1x8x1xf32>
    %245 = arith.mulf %7, %244 : vector<1x8x1xf32>
    %246 = arith.mulf %222, %245 : vector<1x8x1xf32>
    %247 = arith.subf %8, %246 : vector<1x8x1xf32>
    %248 = vector.broadcast %245 : vector<1x8x1xf32> to vector<2x8x128xf32>
    %249 = arith.mulf %113, %248 : vector<2x8x128xf32>
    %250 = vector.broadcast %247 : vector<1x8x1xf32> to vector<2x8x128xf32>
    %251 = arith.addf %249, %250 : vector<2x8x128xf32>
    %cst_42 = arith.constant 0.000000e+00 : f32
    %252 = vector.broadcast %cst_42 : f32 to vector<2x8x128xf32>
    %253 = arith.maximumf %251, %252 : vector<2x8x128xf32>
    %254 = vector.broadcast %245 : vector<1x8x1xf32> to vector<2x8x128xf32>
    %255 = arith.mulf %213, %254 : vector<2x8x128xf32>
    %256 = vector.broadcast %247 : vector<1x8x1xf32> to vector<2x8x128xf32>
    %257 = arith.addf %255, %256 : vector<2x8x128xf32>
    %cst_43 = arith.constant 0.000000e+00 : f32
    %258 = vector.broadcast %cst_43 : f32 to vector<2x8x128xf32>
    %259 = arith.maximumf %257, %258 : vector<2x8x128xf32>
    %cst_44 = arith.constant 0.000000e+00 : f32
    %260 = vector.broadcast %cst_44 : f32 to vector<2x8x128xf32>
    %c1_i32_45 = arith.constant 1 : i32
    %261 = tpu.dynamic_rotate %259 by %c1_i32_45 dim 2 : vector<2x8x128xf32>, i32 -> vector<2x8x128xf32>
    %c1_i32_46 = arith.constant 1 : i32
    %262 = vector.broadcast %c1_i32_46 : i32 to vector<1x1x128xi32>
    %263 = arith.cmpi sge, %9, %262 : vector<1x1x128xi32>
    %cst_47 = arith.constant 0.000000e+00 : f32
    %264 = vector.shape_cast %263 : vector<1x1x128xi1> to vector<1x1x128xi1>
    %265 = vector.broadcast %264 : vector<1x1x128xi1> to vector<2x8x128xi1>
    %266 = vector.broadcast %cst_47 : f32 to vector<2x8x128xf32>
    %267 = arith.select %265, %261, %266 : vector<2x8x128xi1>, vector<2x8x128xf32>
    %268 = vector.extract_strided_slice %5 {offsets = [0, 0, 0, 0, 0], sizes = [1, 8, 1, 8, 1], strides = [1, 1, 1, 1, 1]} : vector<3x8x1x8x1xf32> to vector<1x8x1x8x1xf32>
    %269 = vector.shape_cast %268 : vector<1x8x1x8x1xf32> to vector<8x1x8x1xf32>
    %270 = vector.extract_strided_slice %269 {offsets = [0, 0, 0, 0], sizes = [1, 1, 8, 1], strides = [1, 1, 1, 1]} : vector<8x1x8x1xf32> to vector<1x1x8x1xf32>
    %271 = vector.shape_cast %270 : vector<1x1x8x1xf32> to vector<1x8x1xf32>
    %272 = vector.extract_strided_slice %267 {offsets = [0, 0, 0], sizes = [2, 1, 128], strides = [1, 1, 1]} : vector<2x8x128xf32> to vector<2x1x128xf32>
    %273 = vector.broadcast %271 : vector<1x8x1xf32> to vector<2x8x128xf32>
    %274 = vector.broadcast %272 : vector<2x1x128xf32> to vector<2x8x128xf32>
    %275 = arith.mulf %273, %274 : vector<2x8x128xf32>
    %276 = arith.addf %260, %275 : vector<2x8x128xf32>
    %277 = vector.extract_strided_slice %269 {offsets = [1, 0, 0, 0], sizes = [1, 1, 8, 1], strides = [1, 1, 1, 1]} : vector<8x1x8x1xf32> to vector<1x1x8x1xf32>
    %278 = vector.shape_cast %277 : vector<1x1x8x1xf32> to vector<1x8x1xf32>
    %279 = vector.extract_strided_slice %267 {offsets = [0, 1, 0], sizes = [2, 1, 128], strides = [1, 1, 1]} : vector<2x8x128xf32> to vector<2x1x128xf32>
    %280 = vector.broadcast %278 : vector<1x8x1xf32> to vector<2x8x128xf32>
    %281 = vector.broadcast %279 : vector<2x1x128xf32> to vector<2x8x128xf32>
    %282 = arith.mulf %280, %281 : vector<2x8x128xf32>
    %283 = arith.addf %276, %282 : vector<2x8x128xf32>
    %284 = vector.extract_strided_slice %269 {offsets = [2, 0, 0, 0], sizes = [1, 1, 8, 1], strides = [1, 1, 1, 1]} : vector<8x1x8x1xf32> to vector<1x1x8x1xf32>
    %285 = vector.shape_cast %284 : vector<1x1x8x1xf32> to vector<1x8x1xf32>
    %286 = vector.extract_strided_slice %267 {offsets = [0, 2, 0], sizes = [2, 1, 128], strides = [1, 1, 1]} : vector<2x8x128xf32> to vector<2x1x128xf32>
    %287 = vector.broadcast %285 : vector<1x8x1xf32> to vector<2x8x128xf32>
    %288 = vector.broadcast %286 : vector<2x1x128xf32> to vector<2x8x128xf32>
    %289 = arith.mulf %287, %288 : vector<2x8x128xf32>
    %290 = arith.addf %283, %289 : vector<2x8x128xf32>
    %291 = vector.extract_strided_slice %269 {offsets = [3, 0, 0, 0], sizes = [1, 1, 8, 1], strides = [1, 1, 1, 1]} : vector<8x1x8x1xf32> to vector<1x1x8x1xf32>
    %292 = vector.shape_cast %291 : vector<1x1x8x1xf32> to vector<1x8x1xf32>
    %293 = vector.extract_strided_slice %267 {offsets = [0, 3, 0], sizes = [2, 1, 128], strides = [1, 1, 1]} : vector<2x8x128xf32> to vector<2x1x128xf32>
    %294 = vector.broadcast %292 : vector<1x8x1xf32> to vector<2x8x128xf32>
    %295 = vector.broadcast %293 : vector<2x1x128xf32> to vector<2x8x128xf32>
    %296 = arith.mulf %294, %295 : vector<2x8x128xf32>
    %297 = arith.addf %290, %296 : vector<2x8x128xf32>
    %298 = vector.extract_strided_slice %269 {offsets = [4, 0, 0, 0], sizes = [1, 1, 8, 1], strides = [1, 1, 1, 1]} : vector<8x1x8x1xf32> to vector<1x1x8x1xf32>
    %299 = vector.shape_cast %298 : vector<1x1x8x1xf32> to vector<1x8x1xf32>
    %300 = vector.extract_strided_slice %267 {offsets = [0, 4, 0], sizes = [2, 1, 128], strides = [1, 1, 1]} : vector<2x8x128xf32> to vector<2x1x128xf32>
    %301 = vector.broadcast %299 : vector<1x8x1xf32> to vector<2x8x128xf32>
    %302 = vector.broadcast %300 : vector<2x1x128xf32> to vector<2x8x128xf32>
    %303 = arith.mulf %301, %302 : vector<2x8x128xf32>
    %304 = arith.addf %297, %303 : vector<2x8x128xf32>
    %305 = vector.extract_strided_slice %269 {offsets = [5, 0, 0, 0], sizes = [1, 1, 8, 1], strides = [1, 1, 1, 1]} : vector<8x1x8x1xf32> to vector<1x1x8x1xf32>
    %306 = vector.shape_cast %305 : vector<1x1x8x1xf32> to vector<1x8x1xf32>
    %307 = vector.extract_strided_slice %267 {offsets = [0, 5, 0], sizes = [2, 1, 128], strides = [1, 1, 1]} : vector<2x8x128xf32> to vector<2x1x128xf32>
    %308 = vector.broadcast %306 : vector<1x8x1xf32> to vector<2x8x128xf32>
    %309 = vector.broadcast %307 : vector<2x1x128xf32> to vector<2x8x128xf32>
    %310 = arith.mulf %308, %309 : vector<2x8x128xf32>
    %311 = arith.addf %304, %310 : vector<2x8x128xf32>
    %312 = vector.extract_strided_slice %269 {offsets = [6, 0, 0, 0], sizes = [1, 1, 8, 1], strides = [1, 1, 1, 1]} : vector<8x1x8x1xf32> to vector<1x1x8x1xf32>
    %313 = vector.shape_cast %312 : vector<1x1x8x1xf32> to vector<1x8x1xf32>
    %314 = vector.extract_strided_slice %267 {offsets = [0, 6, 0], sizes = [2, 1, 128], strides = [1, 1, 1]} : vector<2x8x128xf32> to vector<2x1x128xf32>
    %315 = vector.broadcast %313 : vector<1x8x1xf32> to vector<2x8x128xf32>
    %316 = vector.broadcast %314 : vector<2x1x128xf32> to vector<2x8x128xf32>
    %317 = arith.mulf %315, %316 : vector<2x8x128xf32>
    %318 = arith.addf %311, %317 : vector<2x8x128xf32>
    %319 = vector.extract_strided_slice %269 {offsets = [7, 0, 0, 0], sizes = [1, 1, 8, 1], strides = [1, 1, 1, 1]} : vector<8x1x8x1xf32> to vector<1x1x8x1xf32>
    %320 = vector.shape_cast %319 : vector<1x1x8x1xf32> to vector<1x8x1xf32>
    %321 = vector.extract_strided_slice %267 {offsets = [0, 7, 0], sizes = [2, 1, 128], strides = [1, 1, 1]} : vector<2x8x128xf32> to vector<2x1x128xf32>
    %322 = vector.broadcast %320 : vector<1x8x1xf32> to vector<2x8x128xf32>
    %323 = vector.broadcast %321 : vector<2x1x128xf32> to vector<2x8x128xf32>
    %324 = arith.mulf %322, %323 : vector<2x8x128xf32>
    %325 = arith.addf %318, %324 : vector<2x8x128xf32>
    %326 = vector.extract_strided_slice %5 {offsets = [1, 0, 0, 0, 0], sizes = [1, 8, 1, 8, 1], strides = [1, 1, 1, 1, 1]} : vector<3x8x1x8x1xf32> to vector<1x8x1x8x1xf32>
    %327 = vector.shape_cast %326 : vector<1x8x1x8x1xf32> to vector<8x1x8x1xf32>
    %328 = vector.extract_strided_slice %327 {offsets = [0, 0, 0, 0], sizes = [1, 1, 8, 1], strides = [1, 1, 1, 1]} : vector<8x1x8x1xf32> to vector<1x1x8x1xf32>
    %329 = vector.shape_cast %328 : vector<1x1x8x1xf32> to vector<1x8x1xf32>
    %330 = vector.extract_strided_slice %253 {offsets = [0, 0, 0], sizes = [2, 1, 128], strides = [1, 1, 1]} : vector<2x8x128xf32> to vector<2x1x128xf32>
    %331 = vector.broadcast %329 : vector<1x8x1xf32> to vector<2x8x128xf32>
    %332 = vector.broadcast %330 : vector<2x1x128xf32> to vector<2x8x128xf32>
    %333 = arith.mulf %331, %332 : vector<2x8x128xf32>
    %334 = arith.addf %325, %333 : vector<2x8x128xf32>
    %335 = vector.extract_strided_slice %327 {offsets = [1, 0, 0, 0], sizes = [1, 1, 8, 1], strides = [1, 1, 1, 1]} : vector<8x1x8x1xf32> to vector<1x1x8x1xf32>
    %336 = vector.shape_cast %335 : vector<1x1x8x1xf32> to vector<1x8x1xf32>
    %337 = vector.extract_strided_slice %253 {offsets = [0, 1, 0], sizes = [2, 1, 128], strides = [1, 1, 1]} : vector<2x8x128xf32> to vector<2x1x128xf32>
    %338 = vector.broadcast %336 : vector<1x8x1xf32> to vector<2x8x128xf32>
    %339 = vector.broadcast %337 : vector<2x1x128xf32> to vector<2x8x128xf32>
    %340 = arith.mulf %338, %339 : vector<2x8x128xf32>
    %341 = arith.addf %334, %340 : vector<2x8x128xf32>
    %342 = vector.extract_strided_slice %327 {offsets = [2, 0, 0, 0], sizes = [1, 1, 8, 1], strides = [1, 1, 1, 1]} : vector<8x1x8x1xf32> to vector<1x1x8x1xf32>
    %343 = vector.shape_cast %342 : vector<1x1x8x1xf32> to vector<1x8x1xf32>
    %344 = vector.extract_strided_slice %253 {offsets = [0, 2, 0], sizes = [2, 1, 128], strides = [1, 1, 1]} : vector<2x8x128xf32> to vector<2x1x128xf32>
    %345 = vector.broadcast %343 : vector<1x8x1xf32> to vector<2x8x128xf32>
    %346 = vector.broadcast %344 : vector<2x1x128xf32> to vector<2x8x128xf32>
    %347 = arith.mulf %345, %346 : vector<2x8x128xf32>
    %348 = arith.addf %341, %347 : vector<2x8x128xf32>
    %349 = vector.extract_strided_slice %327 {offsets = [3, 0, 0, 0], sizes = [1, 1, 8, 1], strides = [1, 1, 1, 1]} : vector<8x1x8x1xf32> to vector<1x1x8x1xf32>
    %350 = vector.shape_cast %349 : vector<1x1x8x1xf32> to vector<1x8x1xf32>
    %351 = vector.extract_strided_slice %253 {offsets = [0, 3, 0], sizes = [2, 1, 128], strides = [1, 1, 1]} : vector<2x8x128xf32> to vector<2x1x128xf32>
    %352 = vector.broadcast %350 : vector<1x8x1xf32> to vector<2x8x128xf32>
    %353 = vector.broadcast %351 : vector<2x1x128xf32> to vector<2x8x128xf32>
    %354 = arith.mulf %352, %353 : vector<2x8x128xf32>
    %355 = arith.addf %348, %354 : vector<2x8x128xf32>
    %356 = vector.extract_strided_slice %327 {offsets = [4, 0, 0, 0], sizes = [1, 1, 8, 1], strides = [1, 1, 1, 1]} : vector<8x1x8x1xf32> to vector<1x1x8x1xf32>
    %357 = vector.shape_cast %356 : vector<1x1x8x1xf32> to vector<1x8x1xf32>
    %358 = vector.extract_strided_slice %253 {offsets = [0, 4, 0], sizes = [2, 1, 128], strides = [1, 1, 1]} : vector<2x8x128xf32> to vector<2x1x128xf32>
    %359 = vector.broadcast %357 : vector<1x8x1xf32> to vector<2x8x128xf32>
    %360 = vector.broadcast %358 : vector<2x1x128xf32> to vector<2x8x128xf32>
    %361 = arith.mulf %359, %360 : vector<2x8x128xf32>
    %362 = arith.addf %355, %361 : vector<2x8x128xf32>
    %363 = vector.extract_strided_slice %327 {offsets = [5, 0, 0, 0], sizes = [1, 1, 8, 1], strides = [1, 1, 1, 1]} : vector<8x1x8x1xf32> to vector<1x1x8x1xf32>
    %364 = vector.shape_cast %363 : vector<1x1x8x1xf32> to vector<1x8x1xf32>
    %365 = vector.extract_strided_slice %253 {offsets = [0, 5, 0], sizes = [2, 1, 128], strides = [1, 1, 1]} : vector<2x8x128xf32> to vector<2x1x128xf32>
    %366 = vector.broadcast %364 : vector<1x8x1xf32> to vector<2x8x128xf32>
    %367 = vector.broadcast %365 : vector<2x1x128xf32> to vector<2x8x128xf32>
    %368 = arith.mulf %366, %367 : vector<2x8x128xf32>
    %369 = arith.addf %362, %368 : vector<2x8x128xf32>
    %370 = vector.extract_strided_slice %327 {offsets = [6, 0, 0, 0], sizes = [1, 1, 8, 1], strides = [1, 1, 1, 1]} : vector<8x1x8x1xf32> to vector<1x1x8x1xf32>
    %371 = vector.shape_cast %370 : vector<1x1x8x1xf32> to vector<1x8x1xf32>
    %372 = vector.extract_strided_slice %253 {offsets = [0, 6, 0], sizes = [2, 1, 128], strides = [1, 1, 1]} : vector<2x8x128xf32> to vector<2x1x128xf32>
    %373 = vector.broadcast %371 : vector<1x8x1xf32> to vector<2x8x128xf32>
    %374 = vector.broadcast %372 : vector<2x1x128xf32> to vector<2x8x128xf32>
    %375 = arith.mulf %373, %374 : vector<2x8x128xf32>
    %376 = arith.addf %369, %375 : vector<2x8x128xf32>
    %377 = vector.extract_strided_slice %327 {offsets = [7, 0, 0, 0], sizes = [1, 1, 8, 1], strides = [1, 1, 1, 1]} : vector<8x1x8x1xf32> to vector<1x1x8x1xf32>
    %378 = vector.shape_cast %377 : vector<1x1x8x1xf32> to vector<1x8x1xf32>
    %379 = vector.extract_strided_slice %253 {offsets = [0, 7, 0], sizes = [2, 1, 128], strides = [1, 1, 1]} : vector<2x8x128xf32> to vector<2x1x128xf32>
    %380 = vector.broadcast %378 : vector<1x8x1xf32> to vector<2x8x128xf32>
    %381 = vector.broadcast %379 : vector<2x1x128xf32> to vector<2x8x128xf32>
    %382 = arith.mulf %380, %381 : vector<2x8x128xf32>
    %383 = arith.addf %376, %382 : vector<2x8x128xf32>
    %384 = vector.extract_strided_slice %5 {offsets = [2, 0, 0, 0, 0], sizes = [1, 8, 1, 8, 1], strides = [1, 1, 1, 1, 1]} : vector<3x8x1x8x1xf32> to vector<1x8x1x8x1xf32>
    %385 = vector.shape_cast %384 : vector<1x8x1x8x1xf32> to vector<8x1x8x1xf32>
    %386 = vector.extract_strided_slice %385 {offsets = [0, 0, 0, 0], sizes = [1, 1, 8, 1], strides = [1, 1, 1, 1]} : vector<8x1x8x1xf32> to vector<1x1x8x1xf32>
    %387 = vector.shape_cast %386 : vector<1x1x8x1xf32> to vector<1x8x1xf32>
    %388 = vector.extract_strided_slice %259 {offsets = [0, 0, 0], sizes = [2, 1, 128], strides = [1, 1, 1]} : vector<2x8x128xf32> to vector<2x1x128xf32>
    %389 = vector.broadcast %387 : vector<1x8x1xf32> to vector<2x8x128xf32>
    %390 = vector.broadcast %388 : vector<2x1x128xf32> to vector<2x8x128xf32>
    %391 = arith.mulf %389, %390 : vector<2x8x128xf32>
    %392 = arith.addf %383, %391 : vector<2x8x128xf32>
    %393 = vector.extract_strided_slice %385 {offsets = [1, 0, 0, 0], sizes = [1, 1, 8, 1], strides = [1, 1, 1, 1]} : vector<8x1x8x1xf32> to vector<1x1x8x1xf32>
    %394 = vector.shape_cast %393 : vector<1x1x8x1xf32> to vector<1x8x1xf32>
    %395 = vector.extract_strided_slice %259 {offsets = [0, 1, 0], sizes = [2, 1, 128], strides = [1, 1, 1]} : vector<2x8x128xf32> to vector<2x1x128xf32>
    %396 = vector.broadcast %394 : vector<1x8x1xf32> to vector<2x8x128xf32>
    %397 = vector.broadcast %395 : vector<2x1x128xf32> to vector<2x8x128xf32>
    %398 = arith.mulf %396, %397 : vector<2x8x128xf32>
    %399 = arith.addf %392, %398 : vector<2x8x128xf32>
    %400 = vector.extract_strided_slice %385 {offsets = [2, 0, 0, 0], sizes = [1, 1, 8, 1], strides = [1, 1, 1, 1]} : vector<8x1x8x1xf32> to vector<1x1x8x1xf32>
    %401 = vector.shape_cast %400 : vector<1x1x8x1xf32> to vector<1x8x1xf32>
    %402 = vector.extract_strided_slice %259 {offsets = [0, 2, 0], sizes = [2, 1, 128], strides = [1, 1, 1]} : vector<2x8x128xf32> to vector<2x1x128xf32>
    %403 = vector.broadcast %401 : vector<1x8x1xf32> to vector<2x8x128xf32>
    %404 = vector.broadcast %402 : vector<2x1x128xf32> to vector<2x8x128xf32>
    %405 = arith.mulf %403, %404 : vector<2x8x128xf32>
    %406 = arith.addf %399, %405 : vector<2x8x128xf32>
    %407 = vector.extract_strided_slice %385 {offsets = [3, 0, 0, 0], sizes = [1, 1, 8, 1], strides = [1, 1, 1, 1]} : vector<8x1x8x1xf32> to vector<1x1x8x1xf32>
    %408 = vector.shape_cast %407 : vector<1x1x8x1xf32> to vector<1x8x1xf32>
    %409 = vector.extract_strided_slice %259 {offsets = [0, 3, 0], sizes = [2, 1, 128], strides = [1, 1, 1]} : vector<2x8x128xf32> to vector<2x1x128xf32>
    %410 = vector.broadcast %408 : vector<1x8x1xf32> to vector<2x8x128xf32>
    %411 = vector.broadcast %409 : vector<2x1x128xf32> to vector<2x8x128xf32>
    %412 = arith.mulf %410, %411 : vector<2x8x128xf32>
    %413 = arith.addf %406, %412 : vector<2x8x128xf32>
    %414 = vector.extract_strided_slice %385 {offsets = [4, 0, 0, 0], sizes = [1, 1, 8, 1], strides = [1, 1, 1, 1]} : vector<8x1x8x1xf32> to vector<1x1x8x1xf32>
    %415 = vector.shape_cast %414 : vector<1x1x8x1xf32> to vector<1x8x1xf32>
    %416 = vector.extract_strided_slice %259 {offsets = [0, 4, 0], sizes = [2, 1, 128], strides = [1, 1, 1]} : vector<2x8x128xf32> to vector<2x1x128xf32>
    %417 = vector.broadcast %415 : vector<1x8x1xf32> to vector<2x8x128xf32>
    %418 = vector.broadcast %416 : vector<2x1x128xf32> to vector<2x8x128xf32>
    %419 = arith.mulf %417, %418 : vector<2x8x128xf32>
    %420 = arith.addf %413, %419 : vector<2x8x128xf32>
    %421 = vector.extract_strided_slice %385 {offsets = [5, 0, 0, 0], sizes = [1, 1, 8, 1], strides = [1, 1, 1, 1]} : vector<8x1x8x1xf32> to vector<1x1x8x1xf32>
    %422 = vector.shape_cast %421 : vector<1x1x8x1xf32> to vector<1x8x1xf32>
    %423 = vector.extract_strided_slice %259 {offsets = [0, 5, 0], sizes = [2, 1, 128], strides = [1, 1, 1]} : vector<2x8x128xf32> to vector<2x1x128xf32>
    %424 = vector.broadcast %422 : vector<1x8x1xf32> to vector<2x8x128xf32>
    %425 = vector.broadcast %423 : vector<2x1x128xf32> to vector<2x8x128xf32>
    %426 = arith.mulf %424, %425 : vector<2x8x128xf32>
    %427 = arith.addf %420, %426 : vector<2x8x128xf32>
    %428 = vector.extract_strided_slice %385 {offsets = [6, 0, 0, 0], sizes = [1, 1, 8, 1], strides = [1, 1, 1, 1]} : vector<8x1x8x1xf32> to vector<1x1x8x1xf32>
    %429 = vector.shape_cast %428 : vector<1x1x8x1xf32> to vector<1x8x1xf32>
    %430 = vector.extract_strided_slice %259 {offsets = [0, 6, 0], sizes = [2, 1, 128], strides = [1, 1, 1]} : vector<2x8x128xf32> to vector<2x1x128xf32>
    %431 = vector.broadcast %429 : vector<1x8x1xf32> to vector<2x8x128xf32>
    %432 = vector.broadcast %430 : vector<2x1x128xf32> to vector<2x8x128xf32>
    %433 = arith.mulf %431, %432 : vector<2x8x128xf32>
    %434 = arith.addf %427, %433 : vector<2x8x128xf32>
    %435 = vector.extract_strided_slice %385 {offsets = [7, 0, 0, 0], sizes = [1, 1, 8, 1], strides = [1, 1, 1, 1]} : vector<8x1x8x1xf32> to vector<1x1x8x1xf32>
    %436 = vector.shape_cast %435 : vector<1x1x8x1xf32> to vector<1x8x1xf32>
    %437 = vector.extract_strided_slice %259 {offsets = [0, 7, 0], sizes = [2, 1, 128], strides = [1, 1, 1]} : vector<2x8x128xf32> to vector<2x1x128xf32>
    %438 = vector.broadcast %436 : vector<1x8x1xf32> to vector<2x8x128xf32>
    %439 = vector.broadcast %437 : vector<2x1x128xf32> to vector<2x8x128xf32>
    %440 = arith.mulf %438, %439 : vector<2x8x128xf32>
    %441 = arith.addf %434, %440 : vector<2x8x128xf32>
    %442 = vector.extract_strided_slice %1 {offsets = [1, 0, 0, 0], sizes = [1, 2, 4, 128], strides = [1, 1, 1, 1]} : vector<2x2x4x128xf32> to vector<1x2x4x128xf32>
    %443 = vector.shape_cast %442 : vector<1x2x4x128xf32> to vector<2x4x128xf32>
    %c1_i32_48 = arith.constant 1 : i32
    %444 = tpu.dynamic_rotate %443 by %c1_i32_48 dim 2 : vector<2x4x128xf32>, i32 -> vector<2x4x128xf32>
    %c1_i32_49 = arith.constant 1 : i32
    %445 = vector.broadcast %c1_i32_49 : i32 to vector<1x1x128xi32>
    %446 = arith.cmpi sge, %9, %445 : vector<1x1x128xi32>
    %cst_50 = arith.constant 0xFF800000 : f32
    %447 = vector.shape_cast %446 : vector<1x1x128xi1> to vector<1x1x128xi1>
    %448 = vector.broadcast %447 : vector<1x1x128xi1> to vector<2x4x128xi1>
    %449 = vector.broadcast %cst_50 : f32 to vector<2x4x128xf32>
    %450 = arith.select %448, %444, %449 : vector<2x4x128xi1>, vector<2x4x128xf32>
    %451 = vector.extract_strided_slice %1 {offsets = [0, 0, 0, 0], sizes = [1, 2, 4, 128], strides = [1, 1, 1, 1]} : vector<2x2x4x128xf32> to vector<1x2x4x128xf32>
    %452 = vector.shape_cast %451 : vector<1x2x4x128xf32> to vector<2x4x128xf32>
    %453 = arith.maximumf %450, %452 : vector<2x4x128xf32>
    %454 = vector.extract_strided_slice %1 {offsets = [1, 0, 0, 0], sizes = [1, 2, 4, 128], strides = [1, 1, 1, 1]} : vector<2x2x4x128xf32> to vector<1x2x4x128xf32>
    %455 = vector.shape_cast %454 : vector<1x2x4x128xf32> to vector<2x4x128xf32>
    %456 = arith.maximumf %453, %455 : vector<2x4x128xf32>
    %cst_51 = arith.constant 0.000000e+00 : f32
    %457 = vector.broadcast %cst_51 : f32 to vector<2x8x128xf32>
    %458 = vector.extract_strided_slice %6 {offsets = [0, 0, 0, 0], sizes = [1, 1, 8, 1], strides = [1, 1, 1, 1]} : vector<4x1x8x1xf32> to vector<1x1x8x1xf32>
    %459 = vector.shape_cast %458 : vector<1x1x8x1xf32> to vector<1x8x1xf32>
    %460 = vector.extract_strided_slice %456 {offsets = [0, 0, 0], sizes = [2, 1, 128], strides = [1, 1, 1]} : vector<2x4x128xf32> to vector<2x1x128xf32>
    %461 = vector.broadcast %459 : vector<1x8x1xf32> to vector<2x8x128xf32>
    %462 = vector.broadcast %460 : vector<2x1x128xf32> to vector<2x8x128xf32>
    %463 = arith.mulf %461, %462 : vector<2x8x128xf32>
    %464 = arith.addf %457, %463 : vector<2x8x128xf32>
    %465 = vector.extract_strided_slice %6 {offsets = [1, 0, 0, 0], sizes = [1, 1, 8, 1], strides = [1, 1, 1, 1]} : vector<4x1x8x1xf32> to vector<1x1x8x1xf32>
    %466 = vector.shape_cast %465 : vector<1x1x8x1xf32> to vector<1x8x1xf32>
    %467 = vector.extract_strided_slice %456 {offsets = [0, 1, 0], sizes = [2, 1, 128], strides = [1, 1, 1]} : vector<2x4x128xf32> to vector<2x1x128xf32>
    %468 = vector.broadcast %466 : vector<1x8x1xf32> to vector<2x8x128xf32>
    %469 = vector.broadcast %467 : vector<2x1x128xf32> to vector<2x8x128xf32>
    %470 = arith.mulf %468, %469 : vector<2x8x128xf32>
    %471 = arith.addf %464, %470 : vector<2x8x128xf32>
    %472 = vector.extract_strided_slice %6 {offsets = [2, 0, 0, 0], sizes = [1, 1, 8, 1], strides = [1, 1, 1, 1]} : vector<4x1x8x1xf32> to vector<1x1x8x1xf32>
    %473 = vector.shape_cast %472 : vector<1x1x8x1xf32> to vector<1x8x1xf32>
    %474 = vector.extract_strided_slice %456 {offsets = [0, 2, 0], sizes = [2, 1, 128], strides = [1, 1, 1]} : vector<2x4x128xf32> to vector<2x1x128xf32>
    %475 = vector.broadcast %473 : vector<1x8x1xf32> to vector<2x8x128xf32>
    %476 = vector.broadcast %474 : vector<2x1x128xf32> to vector<2x8x128xf32>
    %477 = arith.mulf %475, %476 : vector<2x8x128xf32>
    %478 = arith.addf %471, %477 : vector<2x8x128xf32>
    %479 = vector.extract_strided_slice %6 {offsets = [3, 0, 0, 0], sizes = [1, 1, 8, 1], strides = [1, 1, 1, 1]} : vector<4x1x8x1xf32> to vector<1x1x8x1xf32>
    %480 = vector.shape_cast %479 : vector<1x1x8x1xf32> to vector<1x8x1xf32>
    %481 = vector.extract_strided_slice %456 {offsets = [0, 3, 0], sizes = [2, 1, 128], strides = [1, 1, 1]} : vector<2x4x128xf32> to vector<2x1x128xf32>
    %482 = vector.broadcast %480 : vector<1x8x1xf32> to vector<2x8x128xf32>
    %483 = vector.broadcast %481 : vector<2x1x128xf32> to vector<2x8x128xf32>
    %484 = arith.mulf %482, %483 : vector<2x8x128xf32>
    %485 = arith.addf %478, %484 : vector<2x8x128xf32>
    %486 = arith.addf %485, %441 : vector<2x8x128xf32>
    %cst_52 = arith.constant dense<0.000000e+00> : vector<8xf32>
    %487 = vector.multi_reduction <add>, %486, %cst_52 [0, 2] : vector<2x8x128xf32> to vector<8xf32>
    %488 = vector.shape_cast %487 : vector<8xf32> to vector<1x8x1xf32>
    %cst_53 = arith.constant 2.560000e+02 : f32
    %489 = vector.broadcast %cst_53 : f32 to vector<1x8x1xf32>
    %490 = arith.divf %488, %489 : vector<1x8x1xf32>
    %491 = vector.broadcast %490 : vector<1x8x1xf32> to vector<2x8x128xf32>
    %492 = arith.subf %486, %491 : vector<2x8x128xf32>
    %493 = arith.mulf %492, %492 : vector<2x8x128xf32>
    %cst_54 = arith.constant dense<0.000000e+00> : vector<8xf32>
    %494 = vector.multi_reduction <add>, %493, %cst_54 [0, 2] : vector<2x8x128xf32> to vector<8xf32>
    %495 = vector.shape_cast %494 : vector<8xf32> to vector<1x8x1xf32>
    %cst_55 = arith.constant 2.560000e+02 : f32
    %496 = vector.broadcast %cst_55 : f32 to vector<1x8x1xf32>
    %497 = arith.divf %495, %496 : vector<1x8x1xf32>
    %cst_56 = arith.constant 9.99999974E-6 : f32
    %498 = vector.broadcast %cst_56 : f32 to vector<1x8x1xf32>
    %499 = arith.addf %497, %498 : vector<1x8x1xf32>
    %500 = math.rsqrt %499 : vector<1x8x1xf32>
    %501 = arith.mulf %7, %500 : vector<1x8x1xf32>
    %502 = arith.mulf %490, %501 : vector<1x8x1xf32>
    %503 = arith.subf %8, %502 : vector<1x8x1xf32>
    %c0_57 = arith.constant 0 : index
    %c0_58 = arith.constant 0 : index
    %c0_59 = arith.constant 0 : index
    %c0_60 = arith.constant 0 : index
    %504 = vector.load %arg6[%c0_57, %c0_58, %c0_59, %c0_60] : memref<2x2x8x128xf32, #tpu.memory_space<vmem>>, vector<1x2x8x128xf32>
    %505 = vector.shape_cast %504 : vector<1x2x8x128xf32> to vector<2x8x128xf32>
    %506 = vector.shape_cast %486 : vector<2x8x128xf32> to vector<1x2x8x128xf32>
    tpu.vector_store %arg6[%c0_57, %c0_58, %c0_59, %c0_60], %506 {strides = array<i32>} : memref<2x2x8x128xf32, #tpu.memory_space<vmem>>, vector<1x2x8x128xf32>,
    %507 = vector.broadcast %501 : vector<1x8x1xf32> to vector<2x8x128xf32>
    %508 = arith.mulf %486, %507 : vector<2x8x128xf32>
    %509 = vector.broadcast %503 : vector<1x8x1xf32> to vector<2x8x128xf32>
    %510 = arith.addf %508, %509 : vector<2x8x128xf32>
    %cst_61 = arith.constant 0.000000e+00 : f32
    %511 = vector.broadcast %cst_61 : f32 to vector<2x8x128xf32>
    %512 = arith.maximumf %510, %511 : vector<2x8x128xf32>
    %c1_62 = arith.constant 1 : index
    %c0_63 = arith.constant 0 : index
    %c0_64 = arith.constant 0 : index
    %c0_65 = arith.constant 0 : index
    %513 = vector.load %arg6[%c1_62, %c0_63, %c0_64, %c0_65] : memref<2x2x8x128xf32, #tpu.memory_space<vmem>>, vector<1x2x8x128xf32>
    %514 = vector.shape_cast %513 : vector<1x2x8x128xf32> to vector<2x8x128xf32>
    %515 = vector.shape_cast %512 : vector<2x8x128xf32> to vector<1x2x8x128xf32>
    tpu.vector_store %arg6[%c1_62, %c0_63, %c0_64, %c0_65], %515 {strides = array<i32>} : memref<2x2x8x128xf32, #tpu.memory_space<vmem>>, vector<1x2x8x128xf32>,
    return
  }
}

</mosaic_0001>

<bundles_post_ra>
// kernel: tpu_custom_call.1
= control target key start
LH: loop header
LB: loop body
LE: loop exit
PB: predicated region body
PF: predicated region fallthrough
CT: control target
= control target key end

     0   :  { %v1020_v2 = vmov 0   ;;  %s1021_s25 = smov 1   ;;  %s1480_s0 = inlined_call_operand.vmem [shape: f32[2,2,2,4,128], index: 0, kind: input, shape index: {}]   ;;  %s1481_s1 = inlined_call_operand.vmem [shape: f32[3,4,1,8,1], index: 1, kind: input, shape index: {}]   ;;  %s1482_s2 = inlined_call_operand.vmem [shape: f32[3,8,1,8,1], index: 2, kind: input, shape index: {}]   ;;  %s1483_s3 = inlined_call_operand.vmem [shape: f32[4,1,8,1], index: 3, kind: input, shape index: {}]   ;;  %s1484_s4 = inlined_call_operand.vmem [shape: f32[1,8,1], index: 4, kind: input, shape index: {}]   ;;  %s1485_s5 = inlined_call_operand.vmem [shape: f32[1,8,1], index: 5, kind: input, shape index: {}]   ;;  %s1486_s6 = inlined_call_operand.hbm [shape: f32[2,2,8,128], index: 6, kind: output, shape index: {}]  }
   0x1   :  { %v1064_v0 = vld [vmem:[%s1480_s0 + $0x18] sm:$0xf]  ;;  %v33_v1 = vld [vmem:[%s1481_s1] sm:$0xff]  ;;  %992 = vset.pattern.permute.xlu0 %v1020_v2  ;;  %v1074_v3 = vld [vmem:[%s1480_s0 + $0x1c] sm:$0xf]  ;;  %993 = vset.pattern.permute.xlu1 %v1020_v2 }
   0x2   :  { %77 = vrot.lane.b32.xlu1 %v1064_v0, %s1021_s25  ;;  %88 = vperm.xlu0 %992, %v33_v1   ;;  %v34_v4 = vld [vmem:[%s1481_s1 + $0x8] sm:$0xff]  ;;  %v36_v5 = vld [vmem:[%s1481_s1 + $0x18] sm:$0xff] }
   0x6   :  { %79 = vrot.lane.b32.xlu1 %v1074_v3, %s1021_s25  ;;  %105 = vperm.xlu0 %992, %v34_v4  }
   0x7   :  { %11 = vsyncpa [#allocation3], 0  ;;  %v35_v6 = vld [vmem:[%s1481_s1 + $0x10] sm:$0xff]  ;;  %v38_v7 = vld [vmem:[%s1481_s1 + $0x28] sm:$0xff]  ;;  %s1022_s27 = smov 127   ;;  %v75_v17 = vlaneseq }
   0x8   :  { %v37_v8 = vld [vmem:[%s1481_s1 + $0x20] sm:$0xff]  ;;  %v40_v9 = vld [vmem:[%s1481_s1 + $0x38] sm:$0xff]  ;;  %v39_v10 = vld [vmem:[%s1481_s1 + $0x30] sm:$0xff] }
   0x9   :  { %v42_v11 = vld [vmem:[%s1481_s1 + $0x48] sm:$0xff]  ;;  %v41_v12 = vld [vmem:[%s1481_s1 + $0x40] sm:$0xff]  ;;  %v983_v13 = vld [vmem:[%s1480_s0 + $0x14] sm:$0xf]  ;;  %v1117_v19 = vand.u32 127, %v75_v17  ;;  %v1119_v20 = vshrl.u32 %v75_v17, 7 }
   0xa   :  { %139 = vperm.xlu1 %993, %v36_v5   ;;  %122 = vperm.xlu0 %992, %v35_v6   ;;  %v982_v14 = vld [vmem:[%s1480_s0 + $0x10] sm:$0xf]  ;;  %v44_v15 = vld [vmem:[%s1481_s1 + $0x58] sm:$0xff] }
   0xb   :  { %v43_v16 = vld [vmem:[%s1481_s1 + $0x50] sm:$0xff]  ;;  %vm81_vm0 = vcmp.ge.s32.totalorder %v1117_v19, 1  ;;  %v1123_v22 = vsub.s32 0, %v1119_v20  ;;  %v1126_v23 = vsub.s32 1, %v1119_v20  ;;  %v1129_v24 = vsub.s32 2, %v1119_v20 }
   0xc   :  { %v1132_v25 = vsub.s32 3, %v1119_v20  ;;  %vm326_vm1 = vcmp.lt.s32.totalorder %v1117_v19, 127 }
   0xd   :  { %v162_v29 = vrot.slane %v982_v14, %v1123_v22  ;;  %v166_v30 = vrot.slane %v983_v13, %v1123_v22  ;;  %v179_v31 = vrot.slane %v982_v14, %v1126_v23  ;;  %v183_v32 = vrot.slane %v983_v13, %v1126_v23 }
   0xe   :  { %173 = vperm.xlu1 %993, %v38_v7   ;;  %156 = vperm.xlu0 %992, %v37_v8   ;;  %v1143_v33 = vrot.slane %v982_v14, %v1132_v25  ;;  %v1146_v34 = vrot.slane %v983_v13, %v1132_v25  ;;  %v1149_v35 = vrot.slane %v982_v14, %v1129_v24 }
   0xf   :  { %v1152_v36 = vrot.slane %v983_v13, %v1129_v24  ;;  %v1158_v39 = vrot.slane %v1074_v3, %v1126_v23  ;;  %v1162_v40 = vrot.slane %v1064_v0, %v1126_v23  ;;  %v1168_v44 = vrot.slane %v1064_v0, %v1123_v22 }
  0x10   :  { %v1172_v45 = vrot.slane %v1074_v3, %v1123_v22  ;;  %v1182_v8 = vrot.slane %v1074_v3, %v1132_v25 }
  0x12   :  { %207 = vperm.xlu1 %993, %v40_v9   ;;  %190 = vperm.xlu0 %992, %v39_v10   ;;  %v1186_v9 = vrot.slane %v1064_v0, %v1132_v25 }
  0x16   :  { %241 = vperm.xlu1 %993, %v42_v11   ;;  %224 = vperm.xlu0 %992, %v41_v12  }
  0x1a   :  { %324 = vrot.lane.b32.xlu1 %v983_v13, %s1022_s27  ;;  %322 = vrot.lane.b32.xlu0 %v982_v14, %s1022_s27 }
  0x1e   :  { %275 = vperm.xlu1 %993, %v44_v15   ;;  %258 = vperm.xlu0 %992, %v43_v16  }
  0x74   :  { %v78_v18 = vpop.permute.xlu1 %77 }
  0x75   :  { %v84_v26 = vsel %vm81_vm0, %v78_v18, 0.0  ;;  %v1192_v18 = vrot.slane %v1064_v0, %v1129_v24 }
  0x76   :  { %v111_v37 = vrot.slane %v84_v26, %v1126_v23  ;;  %v94_v41 = vrot.slane %v84_v26, %v1123_v22  ;;  %v128_v54 = vrot.slane %v84_v26, %v1129_v24  ;;  %v145_v55 = vrot.slane %v84_v26, %v1132_v25 }
  0x78   :  { %v80_v21 = vpop.permute.xlu1 %79 }
  0x79   :  { %v85_v27 = vsel %vm81_vm0, %v80_v21, 0.0  ;;  %v1196_v21 = vrot.slane %v1074_v3, %v1129_v24 }
  0x7a   :  { %v115_v38 = vrot.slane %v85_v27, %v1126_v23  ;;  %v98_v42 = vrot.slane %v85_v27, %v1123_v22  ;;  %v132_v56 = vrot.slane %v85_v27, %v1129_v24  ;;  %v149_v57 = vrot.slane %v85_v27, %v1132_v25 }
  0x7d   :  { %v89_v28 = vpop.permute.xlu0 %88 }
  0x7e   :  { %v99_v50 = vmul.f32 %v94_v41, %v89_v28  ;;  %v100_v51 = vmul.f32 %v98_v42, %v89_v28  ;;  %v290_v52 = vmul.f32 %v162_v29, %v89_v28  ;;  %v291_v53 = vmul.f32 %v166_v30, %v89_v28 }
  0x81   :  { %v106_v43 = vpop.permute.xlu0 %105 }
  0x82   :  { %v116_v46 = vmul.f32 %v111_v37, %v106_v43  ;;  %v117_v47 = vmul.f32 %v115_v38, %v106_v43  ;;  %v294_v48 = vmul.f32 %v179_v31, %v106_v43  ;;  %v295_v49 = vmul.f32 %v183_v32, %v106_v43 }
  0x84   :  { %v118_v59 = vadd.f32 %v116_v46, %v99_v50  ;;  %v119_v60 = vadd.f32 %v117_v47, %v100_v51  ;;  %v296_v61 = vadd.f32 %v294_v48, %v290_v52  ;;  %v297_v62 = vadd.f32 %v295_v49, %v291_v53 }
  0x85   :  { %v140_v58 = vpop.permute.xlu1 %139  ;;  %v123_v63 = vpop.permute.xlu0 %122 }
  0x86   :  { %v133_v1 = vmul.f32 %v128_v54, %v123_v63  ;;  %v134_v2 = vmul.f32 %v132_v56, %v123_v63  ;;  %v298_v4 = vmul.f32 %v1149_v35, %v123_v63  ;;  %v299_v5 = vmul.f32 %v1152_v36, %v123_v63 }
  0x87   :  { %v150_v6 = vmul.f32 %v145_v55, %v140_v58  ;;  %v151_v7 = vmul.f32 %v149_v57, %v140_v58  ;;  %v302_v15 = vmul.f32 %v1143_v33, %v140_v58  ;;  %v303_v16 = vmul.f32 %v1146_v34, %v140_v58 }
  0x88   :  { %v135_v10 = vadd.f32 %v133_v1, %v118_v59  ;;  %v136_v11 = vadd.f32 %v134_v2, %v119_v60  ;;  %v300_v12 = vadd.f32 %v298_v4, %v296_v61  ;;  %v301_v13 = vadd.f32 %v299_v5, %v297_v62 }
  0x89   :  { %v174_v14 = vpop.permute.xlu1 %173  ;;  %v157_v17 = vpop.permute.xlu0 %156 }
  0x8a   :  { %v152_v26 = vadd.f32 %v150_v6, %v135_v10  ;;  %v153_v27 = vadd.f32 %v151_v7, %v136_v11  ;;  %v167_v28 = vmul.f32 %v162_v29, %v157_v17  ;;  %v168_v37 = vmul.f32 %v166_v30, %v157_v17 }
  0x8b   :  { %v304_v38 = vadd.f32 %v302_v15, %v300_v12  ;;  %v305_v41 = vadd.f32 %v303_v16, %v301_v13  ;;  %v306_v42 = vmul.f32 %v1168_v44, %v157_v17  ;;  %v307_v43 = vmul.f32 %v1172_v45, %v157_v17 }
  0x8c   :  { %v184_v46 = vmul.f32 %v179_v31, %v174_v14  ;;  %v185_v47 = vmul.f32 %v183_v32, %v174_v14  ;;  %v169_v48 = vadd.f32 %v167_v28, %v152_v26  ;;  %v170_v49 = vadd.f32 %v168_v37, %v153_v27 }
  0x8d   :  { %v208_v0 = vpop.permute.xlu1 %207  ;;  %v310_v50 = vmul.f32 %v1162_v40, %v174_v14  ;;  %v311_v3 = vmul.f32 %v1158_v39, %v174_v14  ;;  %v308_v51 = vadd.f32 %v306_v42, %v304_v38  ;;  %v309_v52 = vadd.f32 %v307_v43, %v305_v41  ;;  %v191_v53 = vpop.permute.xlu0 %190 }
  0x8e   :  { %v186_v29 = vadd.f32 %v184_v46, %v169_v48  ;;  %v187_v30 = vadd.f32 %v185_v47, %v170_v49  ;;  %v201_v54 = vmul.f32 %v1149_v35, %v191_v53  ;;  %v202_v55 = vmul.f32 %v1152_v36, %v191_v53 }
  0x8f   :  { %v312_v31 = vadd.f32 %v310_v50, %v308_v51  ;;  %v313_v32 = vadd.f32 %v311_v3, %v309_v52  ;;  %v218_v56 = vmul.f32 %v1143_v33, %v208_v0  ;;  %v219_v57 = vmul.f32 %v1146_v34, %v208_v0 }
  0x90   :  { %v314_v58 = vmul.f32 %v1192_v18, %v191_v53  ;;  %v315_v59 = vmul.f32 %v1196_v21, %v191_v53  ;;  %v318_v61 = vmul.f32 %v1186_v9, %v208_v0  ;;  %v319_v62 = vmul.f32 %v1182_v8, %v208_v0 }
  0x91   :  { %v242_v60 = vpop.permute.xlu1 %241  ;;  %v203_v63 = vadd.f32 %v201_v54, %v186_v29  ;;  %v204_v1 = vadd.f32 %v202_v55, %v187_v30  ;;  %v225_v35 = vpop.permute.xlu0 %224 }
  0x92   :  { %v316_v2 = vadd.f32 %v314_v58, %v312_v31  ;;  %v317_v36 = vadd.f32 %v315_v59, %v313_v32  ;;  %v235_v4 = vmul.f32 %v1168_v44, %v225_v35  ;;  %v236_v33 = vmul.f32 %v1172_v45, %v225_v35 }
  0x93   :  { %v220_v5 = vadd.f32 %v218_v56, %v203_v63  ;;  %v221_v34 = vadd.f32 %v219_v57, %v204_v1  ;;  %v252_v10 = vmul.f32 %v1162_v40, %v242_v60  ;;  %v253_v12 = vmul.f32 %v1158_v39, %v242_v60 }
  0x94   :  { %v320_v6 = vadd.f32 %v318_v61, %v316_v2  ;;  %v321_v7 = vadd.f32 %v319_v62, %v317_v36 }
  0x95   :  { %v325_v11 = vpop.permute.xlu1 %324  ;;  %v237_v13 = vadd.f32 %v235_v4, %v220_v5  ;;  %v238_v14 = vadd.f32 %v236_v33, %v221_v34  ;;  %v323_v16 = vpop.permute.xlu0 %322 }
  0x96   :  { %v330_v15 = vsel %vm326_vm1, %v325_v11, 0.0  ;;  %v329_v45 = vsel %vm326_vm1, %v323_v16, 0.0 }
  0x97   :  { %v338_v17 = vrot.slane %v330_v15, %v1123_v22  ;;  %v350_v44 = vrot.slane %v330_v15, %v1126_v23  ;;  %v255_v26 = vadd.f32 %v253_v12, %v238_v14  ;;  %v254_v27 = vadd.f32 %v252_v10, %v237_v13 }
  0x98   :  { %v334_v40 = vrot.slane %v329_v45, %v1123_v22  ;;  %v346_v39 = vrot.slane %v329_v45, %v1126_v23  ;;  %v362_v37 = vrot.slane %v330_v15, %v1129_v24  ;;  %v374_v38 = vrot.slane %v330_v15, %v1132_v25 }
  0x99   :  { %v340_v28 = vmul.f32 %v338_v17, %v225_v35  ;;  %v259_v41 = vpop.permute.xlu0 %258  ;;  %v352_v43 = vmul.f32 %v350_v44, %v242_v60  ;;  %v358_v47 = vrot.slane %v329_v45, %v1129_v24  ;;  %v276_v48 = vpop.permute.xlu1 %275  ;;  %v370_v49 = vrot.slane %v329_v45, %v1132_v25  ;;  %v1234_v17 = vld [vmem:[%s1484_s4] sm:$0xff] }
  0x9a   :  { %v339_v46 = vmul.f32 %v334_v40, %v225_v35  ;;  %v269_v0 = vmul.f32 %v1192_v18, %v259_v41  ;;  %v270_v50 = vmul.f32 %v1196_v21, %v259_v41  ;;  %v351_v52 = vmul.f32 %v346_v39, %v242_v60  ;;  %v46_v39 = vld [vmem:[%s1482_s2 + $0x8] sm:$0xff] }
  0x9b   :  { %v342_v42 = vadd.f32 %v340_v28, %v321_v7  ;;  %v364_v53 = vmul.f32 %v362_v37, %v259_v41  ;;  %v286_v29 = vmul.f32 %v1186_v9, %v276_v48  ;;  %v287_v30 = vmul.f32 %v1182_v8, %v276_v48  ;;  %v45_v28 = vld [vmem:[%s1482_s2] sm:$0xff]  ;;  %v47_v37 = vld [vmem:[%s1482_s2 + $0x10] sm:$0xff] }
  0x9c   :  { %v341_v51 = vadd.f32 %v339_v46, %v320_v6  ;;  %v271_v54 = vadd.f32 %v269_v0, %v254_v27  ;;  %v272_v55 = vadd.f32 %v270_v50, %v255_v26  ;;  %v376_v32 = vmul.f32 %v374_v38, %v276_v48  ;;  %v1240_v26 = vld [vmem:[%s1485_s5] sm:$0xff]  ;;  %v48_v38 = vld [vmem:[%s1482_s2 + $0x18] sm:$0xff] }
  0x9d   :  { %v354_v3 = vadd.f32 %v352_v43, %v342_v42  ;;  %v363_v56 = vmul.f32 %v358_v47, %v259_v41  ;;  %v375_v61 = vmul.f32 %v370_v49, %v276_v48  ;;  %v49_v41 = vld [vmem:[%s1482_s2 + $0x20] sm:$0xff]  ;;  %v50_v42 = vld [vmem:[%s1482_s2 + $0x28] sm:$0xff]  ;;  %v51_v43 = vld [vmem:[%s1482_s2 + $0x30] sm:$0xff] }
  0x9e   :  { %v353_v31 = vadd.f32 %v351_v52, %v341_v51  ;;  %v288_v58 = vadd.f32 %v286_v29, %v271_v54  ;;  %v289_v59 = vadd.f32 %v287_v30, %v272_v55  ;;  %v52_v46 = vld [vmem:[%s1482_s2 + $0x38] sm:$0xff]  ;;  %v54_v55 = vld [vmem:[%s1482_s2 + $0x48] sm:$0xff] }
  0x9f   :  { %v366_v57 = vadd.f32 %v364_v53, %v354_v3 }
  0xa0   :  { %v365_v18 = vadd.f32 %v363_v56, %v353_v31  ;;  %v379_v21 = vadd.f32 %v289_v59, %v288_v58  ;;  %v53_v31 = vld [vmem:[%s1482_s2 + $0x40] sm:$0xff]  ;;  %v55_v56 = vld [vmem:[%s1482_s2 + $0x50] sm:$0xff] }
  0xa1   :  { %v378_v62 = vadd.f32 %v376_v32, %v366_v57  ;;  %v56_v32 = vld [vmem:[%s1482_s2 + $0x58] sm:$0xff]  ;;  %v58_v57 = vld [vmem:[%s1482_s2 + $0x68] sm:$0xff] }
  0xa2   :  { %v377_v63 = vadd.f32 %v375_v61, %v365_v18  ;;  %380 = vadd.xlane.f32.xlu0 %v379_v21  ;;  %v59_v61 = vld [vmem:[%s1482_s2 + $0x70] sm:$0xff]  ;;  %v62_v18 = vld [vmem:[%s1482_s2 + $0x88] sm:$0xff]  ;;  %v64_v21 = vld [vmem:[%s1482_s2 + $0x98] sm:$0xff] }
  0xa4   :  { %v383_v60 = vadd.f32 %v378_v62, %v377_v63 }
  0xa6   :  { %384 = vadd.xlane.f32.xlu1 %v383_v60  ;;  %v65_v60 = vld [vmem:[%s1482_s2 + $0xa0] sm:$0xff] }
 0x12b   :  { %v381_v1 = vpop.xlane.xlu0 %380 }
 0x12f   :  { %v385_v9 = vpop.xlane.xlu1 %384 }
 0x130   :  { %v386_v35 = vadd.f32 %v385_v9, %v381_v1  ;;  %v1321_v1 = vld [vmem:[%s1480_s0 + $0x8] sm:$0xf]  ;;  %v1328_v9 = vld [vmem:[%s1480_s0 + $0xc] sm:$0xf] }
 0x132   :  { %v388_v8 = vmul.f32 0.001953125, %v386_v35  ;;  %v66_v35 = vld [vmem:[%s1482_s2 + $0xa8] sm:$0xff] }
 0x134   :  { %v389_v2 = vsub.f32 %v288_v58, %v388_v8  ;;  %v390_v36 = vsub.f32 %v289_v59, %v388_v8  ;;  %v397_v4 = vsub.f32 %v377_v63, %v388_v8  ;;  %v398_v33 = vsub.f32 %v378_v62, %v388_v8 }
 0x136   :  { %v391_v5 = vmul.f32 %v389_v2, %v389_v2  ;;  %v392_v34 = vmul.f32 %v390_v36, %v390_v36  ;;  %v399_v7 = vmul.f32 %v397_v4, %v397_v4  ;;  %v400_v10 = vmul.f32 %v398_v33, %v398_v33  ;;  %v70_v2 = vld [vmem:[%s1483_s3 + $0x8] sm:$0xff]  ;;  %v67_v36 = vld [vmem:[%s1482_s2 + $0xb0] sm:$0xff]  ;;  %v68_v33 = vld [vmem:[%s1482_s2 + $0xb8] sm:$0xff] }
 0x137   :  { %v71_v4 = vld [vmem:[%s1483_s3 + $0x10] sm:$0xff] }
 0x138   :  { %v393_v6 = vadd.f32 %v392_v34, %v391_v5  ;;  %v401_v11 = vadd.f32 %v400_v10, %v399_v7  ;;  %v72_v5 = vld [vmem:[%s1483_s3 + $0x18] sm:$0xff] }
 0x13a   :  { %394 = vadd.xlane.f32.xlu0 %v393_v6 }
 0x13e   :  { %402 = vadd.xlane.f32.xlu0 %v401_v11 }
 0x1c3   :  { %v395_v12 = vpop.xlane.xlu0 %394 }
 0x1c7   :  { %v403_v13 = vpop.xlane.xlu0 %402 }
 0x1c8   :  { %v404_v14 = vadd.f32 %v403_v13, %v395_v12 }
 0x1ca   :  { %v405_v15 = vmul.f32 0.001953125, %v404_v14 }
 0x1cc   :  { %v406_v16 = vadd.f32 1e-05, %v405_v15 }
 0x1ce   :  { %994 = vrsqrt.f32 %v406_v16 }
 0x1db   :  { %v995_v44 = vpop.eup %994 }
 0x1dc   :  { %v408_v45 = vmul.f32 %v995_v44, %v1234_v17 }
 0x1de   :  { %413 = vperm.xlu1 %993, %v408_v45   ;;  %v409_v27 = vmul.f32 %v408_v45, %v388_v8  ;;  %v69_v8 = vld [vmem:[%s1483_s3] sm:$0xff] }
 0x1e0   :  { %v410_v40 = vsub.f32 %v1240_v26, %v409_v27 }
 0x1e2   :  { %441 = vperm.xlu1 %993, %v45_v28   ;;  %420 = vperm.xlu0 %992, %v410_v40  }
 0x1e6   :  { %458 = vperm.xlu1 %993, %v46_v39   ;;  %475 = vperm.xlu0 %992, %v47_v37  }
 0x1ea   :  { %492 = vperm.xlu1 %993, %v48_v38   ;;  %509 = vperm.xlu0 %992, %v49_v41  }
 0x1ee   :  { %526 = vperm.xlu1 %993, %v50_v42   ;;  %543 = vperm.xlu0 %992, %v51_v43  }
 0x1f2   :  { %560 = vperm.xlu1 %993, %v52_v46   ;;  %v1365_v46 = vsub.s32 4, %v1119_v20 }
 0x259   :  { %v414_v47 = vpop.permute.xlu1 %413 }
 0x25a   :  { %v416_v48 = vmul.f32 %v414_v47, %v288_v58  ;;  %v417_v49 = vmul.f32 %v414_v47, %v289_v59  ;;  %v427_v0 = vmul.f32 %v414_v47, %v377_v63  ;;  %v428_v50 = vmul.f32 %v414_v47, %v378_v62  ;;  %v57_v58 = vld [vmem:[%s1482_s2 + $0x60] sm:$0xff]  ;;  %v60_v59 = vld [vmem:[%s1482_s2 + $0x78] sm:$0xff]  ;;  %v63_v63 = vld [vmem:[%s1482_s2 + $0x90] sm:$0xff] }
 0x25b   :  { %v61_v62 = vld [vmem:[%s1482_s2 + $0x80] sm:$0xff] }
 0x25d   :  { %v421_v3 = vpop.permute.xlu0 %420  ;;  %v442_v34 = vpop.permute.xlu1 %441 }
 0x25e   :  { %v1267_v51 = vadd.f32 %v421_v3, %v416_v48  ;;  %v1269_v52 = vadd.f32 %v421_v3, %v417_v49  ;;  %v429_v53 = vadd.f32 %v427_v0, %v421_v3  ;;  %v430_v29 = vadd.f32 %v428_v50, %v421_v3 }
 0x260   :  { %v1271_v30 = vmax.f32 %v429_v53, 0.0  ;;  %v1273_v54 = vmax.f32 %v430_v29, 0.0  ;;  %v1370_v53 = vsub.s32 5, %v1119_v20 }
 0x261   :  { %v459_v6 = vpop.permute.xlu1 %458  ;;  %v476_v7 = vpop.permute.xlu0 %475 }
 0x262   :  { %435 = vrot.lane.b32.xlu1 %v1273_v54, %s1021_s25  ;;  %433 = vrot.lane.b32.xlu0 %v1271_v30, %s1021_s25 }
 0x265   :  { %v493_v10 = vpop.permute.xlu1 %492  ;;  %v510_v11 = vpop.permute.xlu0 %509 }
 0x266   :  { %594 = vperm.xlu1 %993, %v54_v55   ;;  %577 = vperm.xlu0 %992, %v53_v31  }
 0x269   :  { %v527_v12 = vpop.permute.xlu1 %526  ;;  %v544_v13 = vpop.permute.xlu0 %543 }
 0x26a   :  { %628 = vperm.xlu1 %993, %v56_v32   ;;  %611 = vperm.xlu0 %992, %v55_v56  }
 0x26d   :  { %v561_v14 = vpop.permute.xlu1 %560 }
 0x26e   :  { %662 = vperm.xlu1 %993, %v58_v57   ;;  %645 = vperm.xlu0 %992, %v57_v58   ;;  %v1375_v58 = vsub.s32 6, %v1119_v20 }
 0x272   :  { %696 = vperm.xlu1 %993, %v60_v59   ;;  %679 = vperm.xlu0 %992, %v59_v61  }
 0x276   :  { %730 = vperm.xlu1 %993, %v62_v18   ;;  %713 = vperm.xlu0 %992, %v61_v62  }
 0x27a   :  { %764 = vperm.xlu1 %993, %v64_v21   ;;  %747 = vperm.xlu0 %992, %v63_v63  }
 0x27e   :  { %781 = vperm.xlu0 %992, %v65_v60   ;;  %847 = vrot.lane.b32.xlu1 %v1321_v1, %s1021_s25  ;;  %v1380_v60 = vsub.s32 7, %v1119_v20 }
 0x282   :  { %849 = vrot.lane.b32.xlu0 %v1328_v9, %s1021_s25  ;;  %798 = vperm.xlu1 %993, %v66_v35  }
 0x286   :  { %859 = vperm.xlu0 %992, %v69_v8   ;;  %876 = vperm.xlu1 %993, %v70_v2  }
 0x28a   :  { %815 = vperm.xlu0 %992, %v67_v36   ;;  %893 = vperm.xlu1 %993, %v71_v4   ;;  %v1384_v36 = vmax.f32 %v1269_v52, 0.0 }
 0x28e   :  { %832 = vperm.xlu0 %992, %v68_v33   ;;  %910 = vperm.xlu1 %993, %v72_v5  }
 0x2d4   :  { %v436_v15 = vpop.permute.xlu1 %435  ;;  %v434_v16 = vpop.permute.xlu0 %433 }
 0x2d5   :  { %v438_v44 = vsel %vm81_vm0, %v436_v15, 0.0  ;;  %v437_v45 = vsel %vm81_vm0, %v434_v16, 0.0 }
 0x2d6   :  { %v451_v27 = vrot.slane %v438_v44, %v1123_v22  ;;  %v468_v28 = vrot.slane %v438_v44, %v1126_v23  ;;  %v485_v40 = vrot.slane %v438_v44, %v1129_v24  ;;  %v447_v39 = vrot.slane %v437_v45, %v1123_v22 }
 0x2d7   :  { %v464_v37 = vrot.slane %v437_v45, %v1126_v23  ;;  %v481_v38 = vrot.slane %v437_v45, %v1129_v24  ;;  %v502_v43 = vrot.slane %v438_v44, %v1132_v25  ;;  %v498_v49 = vrot.slane %v437_v45, %v1132_v25 }
 0x2d8   :  { %v453_v41 = vmul.f32 %v451_v27, %v442_v34  ;;  %v470_v42 = vmul.f32 %v468_v28, %v459_v6  ;;  %v452_v47 = vmul.f32 %v447_v39, %v442_v34  ;;  %v487_v50 = vmul.f32 %v485_v40, %v476_v7 }
 0x2d9   :  { %v469_v48 = vmul.f32 %v464_v37, %v459_v6  ;;  %v519_v3 = vrot.slane %v438_v44, %v1365_v46  ;;  %v486_v55 = vmul.f32 %v481_v38, %v476_v7  ;;  %v515_v31 = vrot.slane %v437_v45, %v1365_v46 }
 0x2da   :  { %v472_v0 = vadd.f32 %v470_v42, %v453_v41  ;;  %v504_v56 = vmul.f32 %v502_v43, %v493_v10  ;;  %v536_v57 = vrot.slane %v438_v44, %v1370_v53  ;;  %v503_v61 = vmul.f32 %v498_v49, %v493_v10 }
 0x2db   :  { %v471_v29 = vadd.f32 %v469_v48, %v452_v47  ;;  %v532_v18 = vrot.slane %v437_v45, %v1370_v53  ;;  %v521_v21 = vmul.f32 %v519_v3, %v510_v11  ;;  %v553_v63 = vrot.slane %v438_v44, %v1375_v58 }
 0x2dc   :  { %v489_v32 = vadd.f32 %v487_v50, %v472_v0  ;;  %v520_v8 = vmul.f32 %v515_v31, %v510_v11  ;;  %v549_v2 = vrot.slane %v437_v45, %v1375_v58  ;;  %v538_v33 = vmul.f32 %v536_v57, %v527_v12 }
 0x2dd   :  { %v488_v59 = vadd.f32 %v486_v55, %v471_v29  ;;  %v570_v5 = vrot.slane %v438_v44, %v1380_v60  ;;  %v1388_v34 = vmax.f32 %v1267_v51, 0.0  ;;  %v537_v10 = vmul.f32 %v532_v18, %v527_v12 }
 0x2de   :  { %v506_v62 = vadd.f32 %v504_v56, %v489_v32  ;;  %v566_v20 = vrot.slane %v437_v45, %v1380_v60  ;;  %v555_v11 = vmul.f32 %v553_v63, %v544_v13  ;;  %v554_v28 = vmul.f32 %v549_v2, %v544_v13 }
 0x2df   :  { %v505_v35 = vadd.f32 %v503_v61, %v488_v59  ;;  %v572_v52 = vmul.f32 %v570_v5, %v561_v14  ;;  %v587_v39 = vrot.slane %v1384_v36, %v1123_v22  ;;  %v583_v51 = vrot.slane %v1388_v34, %v1123_v22 }
 0x2e0   :  { %v523_v4 = vadd.f32 %v521_v21, %v506_v62  ;;  %v571_v44 = vmul.f32 %v566_v20, %v561_v14  ;;  %v604_v12 = vrot.slane %v1384_v36, %v1126_v23  ;;  %v600_v13 = vrot.slane %v1388_v34, %v1126_v23 }
 0x2e1   :  { %v595_v6 = vpop.permute.xlu1 %594  ;;  %v522_v7 = vadd.f32 %v520_v8, %v505_v35  ;;  %v578_v15 = vpop.permute.xlu0 %577  ;;  %v621_v14 = vrot.slane %v1384_v36, %v1129_v24  ;;  %v617_v3 = vrot.slane %v1388_v34, %v1129_v24  ;;  %v638_v31 = vrot.slane %v1384_v36, %v1132_v25 }
 0x2e2   :  { %v540_v16 = vadd.f32 %v538_v33, %v523_v4  ;;  %v589_v42 = vmul.f32 %v587_v39, %v578_v15  ;;  %v588_v47 = vmul.f32 %v583_v51, %v578_v15  ;;  %v606_v48 = vmul.f32 %v604_v12, %v595_v6 }
 0x2e3   :  { %v539_v27 = vadd.f32 %v537_v10, %v522_v7  ;;  %v605_v0 = vmul.f32 %v600_v13, %v595_v6  ;;  %v634_v57 = vrot.slane %v1388_v34, %v1132_v25  ;;  %v655_v21 = vrot.slane %v1384_v36, %v1365_v46 }
 0x2e4   :  { %v557_v40 = vadd.f32 %v555_v11, %v540_v16  ;;  %v651_v8 = vrot.slane %v1388_v34, %v1365_v46  ;;  %v672_v33 = vrot.slane %v1384_v36, %v1370_v53  ;;  %v668_v7 = vrot.slane %v1388_v34, %v1370_v53 }
 0x2e5   :  { %v556_v37 = vadd.f32 %v554_v28, %v539_v27  ;;  %v629_v38 = vpop.permute.xlu1 %628  ;;  %v612_v41 = vpop.permute.xlu0 %611  ;;  %v689_v11 = vrot.slane %v1384_v36, %v1375_v58  ;;  %v723_v13 = vrot.slane %v1273_v54, %v1123_v22 }
 0x2e6   :  { %v574_v45 = vadd.f32 %v572_v52, %v557_v40  ;;  %v623_v56 = vmul.f32 %v621_v14, %v612_v41  ;;  %v622_v61 = vmul.f32 %v617_v3, %v612_v41  ;;  %v640_v18 = vmul.f32 %v638_v31, %v629_v38 }
 0x2e7   :  { %v573_v43 = vadd.f32 %v571_v44, %v556_v37  ;;  %v639_v63 = vmul.f32 %v634_v57, %v629_v38  ;;  %v685_v40 = vrot.slane %v1388_v34, %v1375_v58  ;;  %v706_v37 = vrot.slane %v1384_v36, %v1380_v60 }
 0x2e8   :  { %v591_v49 = vadd.f32 %v589_v42, %v574_v45  ;;  %v702_v38 = vrot.slane %v1388_v34, %v1380_v60  ;;  %v740_v36 = vrot.slane %v1273_v54, %v1126_v23  ;;  %v736_v34 = vrot.slane %v1271_v30, %v1126_v23 }
 0x2e9   :  { %v590_v50 = vadd.f32 %v588_v47, %v573_v43  ;;  %v663_v29 = vpop.permute.xlu1 %662  ;;  %v646_v55 = vpop.permute.xlu0 %645 }
 0x2ea   :  { %v608_v32 = vadd.f32 %v606_v48, %v591_v49  ;;  %v657_v6 = vmul.f32 %v655_v21, %v646_v55  ;;  %v656_v20 = vmul.f32 %v651_v8, %v646_v55  ;;  %v674_v15 = vmul.f32 %v672_v33, %v663_v29 }
 0x2eb   :  { %v607_v59 = vadd.f32 %v605_v0, %v590_v50  ;;  %v673_v27 = vmul.f32 %v668_v7, %v663_v29  ;;  %v719_v48 = vrot.slane %v1271_v30, %v1123_v22 }
 0x2ec   :  { %v625_v62 = vadd.f32 %v623_v56, %v608_v32  ;;  %v757_v32 = vrot.slane %v1273_v54, %v1129_v24  ;;  %v24_v56 = vld [vmem:[%s1480_s0] sm:$0xf] }
 0x2ed   :  { %v624_v35 = vadd.f32 %v622_v61, %v607_v59  ;;  %v697_v2 = vpop.permute.xlu1 %696  ;;  %v680_v4 = vpop.permute.xlu0 %679  ;;  %v770_v61 = vrot.slane %v1271_v30, %v1132_v25 }
 0x2ee   :  { %v642_v5 = vadd.f32 %v640_v18, %v625_v62  ;;  %v691_v51 = vmul.f32 %v689_v11, %v680_v4  ;;  %v690_v12 = vmul.f32 %v685_v40, %v680_v4  ;;  %v708_v45 = vmul.f32 %v706_v37, %v697_v2 }
 0x2ef   :  { %v641_v10 = vadd.f32 %v639_v63, %v624_v35  ;;  %v707_v43 = vmul.f32 %v702_v38, %v697_v2  ;;  %v753_v18 = vrot.slane %v1271_v30, %v1129_v24  ;;  %v774_v63 = vrot.slane %v1273_v54, %v1132_v25 }
 0x2f0   :  { %v659_v16 = vadd.f32 %v657_v6, %v642_v5  ;;  %v787_v5 = vrot.slane %v1271_v30, %v1365_v46 }
 0x2f1   :  { %v658_v28 = vadd.f32 %v656_v20, %v641_v10  ;;  %v731_v52 = vpop.permute.xlu1 %730  ;;  %v714_v39 = vpop.permute.xlu0 %713  ;;  %v791_v20 = vrot.slane %v1273_v54, %v1365_v46 }
 0x2f2   :  { %v676_v44 = vadd.f32 %v674_v15, %v659_v16  ;;  %v725_v50 = vmul.f32 %v723_v13, %v714_v39  ;;  %v724_v29 = vmul.f32 %v719_v48, %v714_v39  ;;  %v742_v55 = vmul.f32 %v740_v36, %v731_v52  ;;  %v25_v15 = vld [vmem:[%s1480_s0 + $0x4] sm:$0xf]  ;;  %s1023_s0 = smov [#allocation2]  }
 0x2f3   :  { %v675_v41 = vadd.f32 %v673_v27, %v658_v28  ;;  %v741_v57 = vmul.f32 %v736_v34, %v731_v52  ;;  %v804_v16 = vrot.slane %v1271_v30, %v1370_v53  ;;  %v808_v52 = vrot.slane %v1273_v54, %v1370_v53  ;;  %s971_s18 = sshll.u32 %s1023_s0, 4  ;;  %s972_s18 = int_to_ptr.vmem [resolvable:$true] %s971_s18 }
 0x2f4   :  { %v693_v42 = vadd.f32 %v691_v51, %v676_v44  ;;  %s998_s19 = scalar_lea.vmem %s972_s18, 512  ;;  %p1003_p1 = scmp.lt.s32.totalorder %s972_s18, %s972_s18 }
 0x2f5   :  { %v692_v47 = vadd.f32 %v690_v12, %v675_v41  ;;  %v765_v49 = vpop.permute.xlu1 %764  ;;  %v748_v14 = vpop.permute.xlu0 %747  ;;  %p999_p0 = scmp.ne.s32.totalorder %s972_s18, %s998_s19  ;;  %p1004_p2 = scmp.lt.s32.totalorder %s998_s19, %s998_s19 }
 0x2f6   :  { %v710_v0 = vadd.f32 %v708_v45, %v693_v42  ;;  %v759_v8 = vmul.f32 %v757_v32, %v748_v14  ;;  %v758_v33 = vmul.f32 %v753_v18, %v748_v14  ;;  %v776_v7 = vmul.f32 %v774_v63, %v765_v49 }
 0x2f7   :  { %v709_v3 = vadd.f32 %v707_v43, %v692_v47  ;;  %v775_v11 = vmul.f32 %v770_v61, %v765_v49  ;;  %p1005_p3 = por %p1004_p2, %p1003_p1 }
 0x2f8   :  { %v727_v31 = vadd.f32 %v725_v50, %v710_v0 }
 0x2f9   :  { %v726_v59 = vadd.f32 %v724_v29, %v709_v3  ;;  %v782_v62 = vpop.permute.xlu0 %781  ;;  %v848_v21 = vpop.permute.xlu1 %847  ;;  %v821_v3 = vrot.slane %v1271_v30, %v1375_v58  ;;  %v825_v29 = vrot.slane %v1273_v54, %v1375_v58  ;;  %p1006_p4 = pnand %p1005_p3, %p999_p0 }
 0x2fa   :  { %v744_v35 = vadd.f32 %v742_v55, %v727_v31  ;;  %v851_v2 = vsel %vm81_vm0, %v848_v21, -inf  ;;  %v792_v44 = vmul.f32 %v787_v5, %v782_v62  ;;  %v793_v51 = vmul.f32 %v791_v20, %v782_v62 }
 0x2fb   :  { %v743_v4 = vadd.f32 %v741_v57, %v726_v59  ;;  %v853_v6 = vmax.f32 %v851_v2, %v24_v56  ;;  %v838_v62 = vrot.slane %v1271_v30, %v1380_v60  ;;  %v842_v21 = vrot.slane %v1273_v54, %v1380_v60 }
 0x2fc   :  { %v761_v10 = vadd.f32 %v759_v8, %v744_v35 }
 0x2fd   :  { %v760_v27 = vadd.f32 %v758_v33, %v743_v4  ;;  %v855_v28 = vmax.f32 %v853_v6, %v1321_v1  ;;  %v850_v40 = vpop.permute.xlu0 %849  ;;  %v799_v39 = vpop.permute.xlu1 %798 }
 0x2fe   :  { %v778_v37 = vadd.f32 %v776_v7, %v761_v10  ;;  %v852_v46 = vsel %vm81_vm0, %v850_v40, -inf  ;;  %v810_v13 = vmul.f32 %v808_v52, %v799_v39  ;;  %v809_v47 = vmul.f32 %v804_v16, %v799_v39 }
 0x2ff   :  { %v777_v38 = vadd.f32 %v775_v11, %v760_v27  ;;  %v854_v41 = vmax.f32 %v852_v46, %v25_v15  ;;  %v865_v12 = vrot.slane %v855_v28, %v1123_v22  ;;  %v882_v45 = vrot.slane %v855_v28, %v1126_v23 }
 0x300   :  { %v795_v42 = vadd.f32 %v793_v51, %v778_v37 }
 0x301   :  { %v794_v1 = vadd.f32 %v792_v44, %v777_v38  ;;  %v856_v43 = vmax.f32 %v854_v41, %v1328_v9  ;;  %v860_v53 = vpop.permute.xlu0 %859  ;;  %v877_v48 = vpop.permute.xlu1 %876  ;;  %v899_v9 = vrot.slane %v855_v28, %v1129_v24 }
 0x302   :  { %v812_v49 = vadd.f32 %v810_v13, %v795_v42  ;;  %v870_v14 = vmul.f32 %v865_v12, %v860_v53  ;;  %v887_v36 = vmul.f32 %v882_v45, %v877_v48 }
 0x303   :  { %v811_v0 = vadd.f32 %v809_v47, %v794_v1  ;;  %v869_v19 = vrot.slane %v856_v43, %v1123_v22  ;;  %v886_v50 = vrot.slane %v856_v43, %v1126_v23  ;;  %v903_v34 = vrot.slane %v856_v43, %v1129_v24 }
 0x304   :  { %v889_v18 = vadd.f32 %v887_v36, %v870_v14  ;;  %v916_v24 = vrot.slane %v855_v28, %v1132_v25  ;;  %v920_v35 = vrot.slane %v856_v43, %v1132_v25 }
 0x305   :  { %v871_v55 = vmul.f32 %v869_v19, %v860_v53  ;;  %v888_v31 = vmul.f32 %v886_v50, %v877_v48  ;;  %v816_v32 = vpop.permute.xlu0 %815  ;;  %v894_v56 = vpop.permute.xlu1 %893 }
 0x306   :  { %v826_v57 = vmul.f32 %v821_v3, %v816_v32  ;;  %v827_v59 = vmul.f32 %v825_v29, %v816_v32  ;;  %v904_v61 = vmul.f32 %v899_v9, %v894_v56  ;;  %v905_v22 = vmul.f32 %v903_v34, %v894_v56 }
 0x307   :  { %v890_v23 = vadd.f32 %v888_v31, %v871_v55 }
 0x308   :  { %v828_v63 = vadd.f32 %v826_v57, %v811_v0  ;;  %v829_v58 = vadd.f32 %v827_v59, %v812_v49  ;;  %v906_v8 = vadd.f32 %v904_v61, %v889_v18 }
 0x309   :  { %v907_v2 = vadd.f32 %v905_v22, %v890_v23  ;;  %v833_v4 = vpop.permute.xlu0 %832  ;;  %v911_v33 = vpop.permute.xlu1 %910 }
 0x30a   :  { %v843_v5 = vmul.f32 %v838_v62, %v833_v4  ;;  %v844_v6 = vmul.f32 %v842_v21, %v833_v4  ;;  %v921_v7 = vmul.f32 %v916_v24, %v911_v33  ;;  %v922_v10 = vmul.f32 %v920_v35, %v911_v33 }
 0x30c   :  { %v845_v20 = vadd.f32 %v843_v5, %v828_v63  ;;  %v846_v15 = vadd.f32 %v844_v6, %v829_v58  ;;  %v923_v30 = vadd.f32 %v921_v7, %v906_v8  ;;  %v924_v16 = vadd.f32 %v922_v10, %v907_v2 }
 0x30e   :  { %v925_v11 = vadd.f32 %v923_v30, %v845_v20  ;;  %v926_v54 = vadd.f32 %v924_v16, %v846_v15 }
 0x310   :  { %945 = vst [vmem:[#allocation2] sm:$0xff] %v925_v11  ;;  %946 = vst [vmem:[#allocation2 + $0x8] sm:$0xff] %v926_v54  ;;  %v927_v60 = vadd.f32 %v926_v54, %v925_v11 }
 0x312   :  { %928 = vadd.xlane.f32.xlu0 %v927_v60 }
 0x39b   :  { %v929_v27 = vpop.xlane.xlu0 %928 }
 0x39c   :  { %v931_v25 = vmul.f32 0.00390625, %v929_v27 }
 0x39e   :  { %v932_v28 = vsub.f32 %v925_v11, %v931_v25  ;;  %v933_v40 = vsub.f32 %v926_v54, %v931_v25 }
 0x3a0   :  { %v934_v52 = vmul.f32 %v932_v28, %v932_v28  ;;  %v935_v39 = vmul.f32 %v933_v40, %v933_v40 }
 0x3a2   :  { %v936_v37 = vadd.f32 %v935_v39, %v934_v52 }
 0x3a4   :  { %937 = vadd.xlane.f32.xlu1 %v936_v37 }
 0x42d   :  { %v938_v44 = vpop.xlane.xlu1 %937 }
 0x42e   :  { %v939_v51 = vmul.f32 0.00390625, %v938_v44 }
 0x430   :  { %v940_v46 = vadd.f32 1e-05, %v939_v51 }
 0x432   :  { %996 = vrsqrt.f32 %v940_v46 }
 0x43f   :  { %v997_v38 = vpop.eup %996 }
 0x440   :  { %v942_v41 = vmul.f32 %v997_v38, %v1234_v17 }
 0x442   :  { %949 = vperm.xlu0 %992, %v942_v41   ;;  %v943_v12 = vmul.f32 %v942_v41, %v931_v25 }
 0x444   :  { %v944_v45 = vsub.f32 %v1240_v26, %v943_v12 }
 0x446   :  { %956 = vperm.xlu1 %993, %v944_v45  }
 0x4bd   :  { %v950_v42 = vpop.permute.xlu0 %949 }
 0x4be   :  { %v952_v13 = vmul.f32 %v950_v42, %v925_v11  ;;  %v953_v1 = vmul.f32 %v950_v42, %v926_v54 }
 0x4c1   :  { %v957_v43 = vpop.permute.xlu1 %956 }
 0x4c2   :  { %v959_v47 = vadd.f32 %v957_v43, %v952_v13  ;;  %v960_v53 = vadd.f32 %v957_v43, %v953_v1 }
 0x4c4   :  { %v961_v48 = vmax.f32 %v959_v47, 0.0  ;;  %v962_v49 = vmax.f32 %v960_v53, 0.0 }
 0x4c6   :  { %964 = vst [vmem:[#allocation2 + $0x10] sm:$0xff] %v961_v48  ;;  %965 = vst [vmem:[#allocation2 + $0x18] sm:$0xff] %v962_v49 }
 0x4c7   :  { %1009 = shalt.err (!%p1006_p4)
}
 0x4c8   :  { %s1024_s20 = smov 128   ;;  %s1025_s21 = smov 8  }
 0x4c9   :  { %977 = dma.vmem_to_hbm [thread:$0]  %s972_s18, 512, %s1486_s6, [#allocation3], %s1024_s20, %s1024_s20, %s1025_s21  }
 0x4ca   :  { %1018 = dma.done.wait [#allocation3], 512  }
 0x4cb   :  { %1019 = vsyncadd [#allocation3], 4294966784 }
 0x4cc   :  { %981 = vsyncpa [#allocation3], 1 }

</bundles_post_ra>
